<compile_context>
chip_gen: v6e
topology: v6e:2x2x1
jax: 0.10.0
libtpu: 0.0.40
codegen_flags: <defaults>
</compile_context>

<pallas_src>
import numpy as np
import jax
import jax.numpy as jnp
from jax import lax
from jax.experimental import pallas as pl

# ---------------- configuration (small, consistent with the module) ----------------
B = 2          # batch
S = 8          # sequence length
D_MODEL = 16   # module arg `d_model`; internal width is d_model*2
DM = D_MODEL * 2          # = 32, the actual feature width used everywhere
N_HEADS = 4
D_K = DM // N_HEADS       # = 8
D_FF = 64
EPS = 1e-5
NEG_INF = -1.0e9

W_SLAB_ROWS = 3 * DM + D_FF   # 160: [wqkv | wo | w1 | w2] stacked on sublanes, padded to 128 lanes


def encoder_layer_kernel(x_ref, mask_ref, vec_ref, w_ref, out_ref, attnw_ref):
    x = x_ref[...]                                        # (B*S, DM) = (16, 32) f32

    # ---- unpack the small-vector param slab (one operand; a few one-time slices) ----
    vec = vec_ref[...]                                    # (8, 128)
    v32 = vec[0:6, 0:DM]                                  # DM-wide vectors stacked on sublanes
    ln1_g, ln1_b = v32[0:1, :], v32[1:2, :]
    ln2_g, ln2_b = v32[2:3, :], v32[3:4, :]
    bo,    b2    = v32[4:5, :], v32[5:6, :]
    bqkv = vec[6:7, 0:3 * DM]                             # (1, 96)
    b1   = vec[7:8, 0:D_FF]                               # (1, 64)

    # ---- unpack the weight slab (one operand; sublane starts are multiples of 8) ----
    wqkv = w_ref[0:DM, 0:3 * DM]                          # (32, 96)  WQ columns pre-scaled
    wo   = w_ref[DM:2 * DM, 0:DM]                         # (32, 32)
    w1   = w_ref[2 * DM:3 * DM, 0:D_FF]                   # (32, 64)
    w2   = w_ref[3 * DM:3 * DM + D_FF, 0:DM]              # (64, 32)

    # ---------------- LayerNorm1 (pre-attention), all B*S rows at once ----------------
    mu = jnp.mean(x, axis=-1, keepdims=True)
    var = jnp.mean((x - mu) ** 2, axis=-1, keepdims=True)
    h = (x - mu) * lax.rsqrt(var + EPS) * ln1_g + ln1_b

    # ---------------- fused QKV projection: one MXU dot for all rows/heads ----------------
    qkv = jnp.dot(h, wqkv, preferred_element_type=jnp.float32) + bqkv   # (16, 96)

    # mask compare hoisted fully out of the loops (replacement semantics of masked_fill_)
    masks = [mask_ref[b] > 0 for b in range(B)]           # each (S, S) bool

    ctx = [jnp.zeros((S, DM), jnp.float32) for _ in range(B)]
    w_packed = [[None] * N_HEADS for _ in range(B)]

    # heads outer / batch inner: lane-slice q/k/v ONCE per head (all rows);
    # per-batch slicing is then sublane-only (aligned, cheap).
    for hd in range(N_HEADS):
        lo = hd * D_K
        q_h = qkv[:, lo:lo + D_K]                         # (16, 8)   (already scaled by 1/sqrt(dk))
        k_h = qkv[:, DM + lo:DM + lo + D_K]               # (16, 8)
        v_h = qkv[:, 2 * DM + lo:2 * DM + lo + D_K]       # (16, 8)
        wo_h = wo[lo:lo + D_K, :]                         # (8, 32)   this head's W_out rows
        for b in range(B):
            rows = slice(b * S, (b + 1) * S)
            qb, kb, vb = q_h[rows, :], k_h[rows, :], v_h[rows, :]
            # Q @ K^T without materializing a transposed K: contract dim 1 of both operands.
            score = lax.dot_general(qb, kb, (((1,), (1,)), ((), ())),
                                    preferred_element_type=jnp.float32)        # (S, S)
            score = jnp.where(masks[b], NEG_INF, score)   # keep replacement semantics
            score = score - jnp.max(score, axis=-1, keepdims=True)  # keep: fully-masked rows -> 1/S
            p = jnp.exp(score)
            denom = jnp.sum(p, axis=-1, keepdims=True)
            inv = pl.reciprocal(denom, approx=True)       # EUP slot
            inv = inv * (2.0 - denom * inv)               # one Newton step -> exact-to-f32 weights
            w = p * inv
            w_packed[b][hd] = w
            # fold this head's context through its W_out rows (no lane concat of head outputs)
            head_ctx = jnp.dot(w, vb, preferred_element_type=jnp.float32)      # (S, D_K)
            ctx[b] = ctx[b] + jnp.dot(head_ctx, wo_h, preferred_element_type=jnp.float32)

    # single lane-packed store of all attention weights: (S, B*H*S) = (8, 64)
    attnw_ref[...] = jnp.concatenate(
        [w_packed[b][hd] for b in range(B) for hd in range(N_HEADS)], axis=1
    ).astype(attnw_ref.dtype)

    attn_out = jnp.concatenate(ctx, axis=0) + bo          # (B*S, DM)
    # dropout1: identity (eval)

    # ---------------- residual + LayerNorm2, all rows ----------------
    y = x + attn_out
    mu2 = jnp.mean(y, axis=-1, keepdims=True)
    var2 = jnp.mean((y - mu2) ** 2, axis=-1, keepdims=True)
    y2 = (y - mu2) * lax.rsqrt(var2 + EPS) * ln2_g + ln2_b

    # ---------------- position-wise FFN, all rows ----------------
    f1 = jnp.maximum(jnp.dot(y2, w1, preferred_element_type=jnp.float32) + b1, 0.0)
    f2 = jnp.dot(f1, w2, preferred_element_type=jnp.float32) + b2
    # dropout2: identity (eval)

    out_ref[...] = (y2 + f2).astype(out_ref.dtype)


def pack_params(params):
    """One-time host-side packing (run OUTSIDE jit): fuse QKV, fold 1/sqrt(d_k) into WQ & bq,
    and collapse everything into one weight slab + one small-vector slab."""
    (ln1_g, ln1_b, wq, bq, wk, bk, wv, bv, wo, bo,
     ln2_g, ln2_b, w1, b1, w2, b2) = params
    scale = 1.0 / np.sqrt(D_K)

    wqkv = jnp.concatenate([wq * scale, wk, wv], axis=1)          # (DM, 3*DM)
    bqkv = jnp.concatenate([bq * scale, bk, bv], axis=1)          # (1, 3*DM)

    w_slab = jnp.zeros((W_SLAB_ROWS, 128), jnp.float32)
    w_slab = w_slab.at[0:DM, 0:3 * DM].set(wqkv)
    w_slab = w_slab.at[DM:2 * DM, 0:DM].set(wo)
    w_slab = w_slab.at[2 * DM:3 * DM, 0:D_FF].set(w1)
    w_slab = w_slab.at[3 * DM:3 * DM + D_FF, 0:DM].set(w2)

    vec_slab = jnp.zeros((8, 128), jnp.float32)
    vec_slab = vec_slab.at[0, 0:DM].set(ln1_g[0])
    vec_slab = vec_slab.at[1, 0:DM].set(ln1_b[0])
    vec_slab = vec_slab.at[2, 0:DM].set(ln2_g[0])
    vec_slab = vec_slab.at[3, 0:DM].set(ln2_b[0])
    vec_slab = vec_slab.at[4, 0:DM].set(bo[0])
    vec_slab = vec_slab.at[5, 0:DM].set(b2[0])
    vec_slab = vec_slab.at[6, 0:3 * DM].set(bqkv[0])
    vec_slab = vec_slab.at[7, 0:D_FF].set(b1[0])
    return vec_slab, w_slab


@jax.jit
def encoder_layer(x, mask, vec_slab, w_slab):
    """x: (B, S, DM) f32, mask: (B, S, S) int32 (1 == masked). Params pre-packed by pack_params."""
    x2d = x.reshape(B * S, DM)                            # trivial leading-dim collapse

    out2d, attnw_packed = pl.pallas_call(
        encoder_layer_kernel,
        out_shape=(jax.ShapeDtypeStruct((B * S, DM), jnp.float32),
                   jax.ShapeDtypeStruct((S, B * N_HEADS * S), jnp.float32)),
    )(x2d, mask, vec_slab, w_slab)

    out = out2d.reshape(B, S, DM)
    # unpack (S, B*H*S) lane-packed slab -> (B, H, S, S)   [cheap, outside the kernel]
    attn_w = attnw_packed.reshape(S, B, N_HEADS, S).transpose(1, 2, 0, 3)
    return out, attn_w


# ---------------- pure-JAX reference for sanity check ----------------
def encoder_layer_ref(x, mask, params):
    (ln1_g, ln1_b, wq, bq, wk, bk, wv, bv, wo, bo,
     ln2_g, ln2_b, w1, b1, w2, b2) = params

    def ln(z, g, b):
        mu = jnp.mean(z, -1, keepdims=True)
        var = jnp.mean((z - mu) ** 2, -1, keepdims=True)
        return (z - mu) * lax.rsqrt(var + EPS) * g + b

    h = ln(x, ln1_g, ln1_b)
    q = h @ wq + bq
    k = h @ wk + bk
    v = h @ wv + bv
    qh = q.reshape(B, S, N_HEADS, D_K).transpose(0, 2, 1, 3)
    kh = k.reshape(B, S, N_HEADS, D_K).transpose(0, 2, 1, 3)
    vh = v.reshape(B, S, N_HEADS, D_K).transpose(0, 2, 1, 3)
    score = jnp.einsum("bhqd,bhkd->bhqk", qh, kh) / np.sqrt(D_K)
    score = jnp.where(mask[:, None, :, :] > 0, NEG_INF, score)
    w = jax.nn.softmax(score, axis=-1)
    attn = jnp.einsum("bhqk,bhkd->bhqd", w, vh)
    attn = attn.transpose(0, 2, 1, 3).reshape(B, S, DM)
    attn_out = attn @ wo + bo
    y2 = ln(x + attn_out, ln2_g, ln2_b)
    ffn = jnp.maximum(y2 @ w1 + b1, 0.0) @ w2 + b2
    return y2 + ffn, w


if __name__ == "__main__":
    key = jax.random.PRNGKey(0)
    keys = jax.random.split(key, 12)

    x = jax.random.normal(keys[0], (B, S, DM), jnp.float32)
    mask = (jax.random.uniform(keys[1], (B, S, S)) < 0.2).astype(jnp.int32)

    def init_w(k, shape, fan_in):
        return jax.random.normal(k, shape, jnp.float32) / np.sqrt(fan_in)

    params = (
        jnp.ones((1, DM), jnp.float32),                 # ln1 gamma
        jnp.zeros((1, DM), jnp.float32),                # ln1 beta
        init_w(keys[2], (DM, DM), DM),                  # WQ
        jnp.zeros((1, DM), jnp.float32),
        init_w(keys[3], (DM, DM), DM),                  # WK
        jnp.zeros((1, DM), jnp.float32),
        init_w(keys[4], (DM, DM), DM),                  # WV
        jnp.zeros((1, DM), jnp.float32),
        init_w(keys[5], (DM, DM), DM),                  # W_out
        jnp.zeros((1, DM), jnp.float32),
        jnp.ones((1, DM), jnp.float32),                 # ln2 gamma
        jnp.zeros((1, DM), jnp.float32),                # ln2 beta
        init_w(keys[6], (DM, D_FF), DM),                # FFN W1
        jnp.zeros((1, D_FF), jnp.float32),
        init_w(keys[7], (D_FF, DM), D_FF),              # FFN W2
        jnp.zeros((1, DM), jnp.float32),
    )

    # one-time parameter packing, outside the jitted per-call path (per perf review)
    vec_slab, w_slab = pack_params(params)
    vec_slab, w_slab = jax.block_until_ready((vec_slab, w_slab))

    out, attn_w = encoder_layer(x, mask, vec_slab, w_slab)
    jax.block_until_ready((out, attn_w))

    ref_out, ref_w = encoder_layer_ref(x, mask, params)
    # Tight tolerances restored: softmax denominator uses approx reciprocal + 1 Newton step,
    # so attention weights are exact to f32 rounding.
    np.testing.assert_allclose(np.asarray(out), np.asarray(ref_out), rtol=1e-3, atol=1e-4)
    np.testing.assert_allclose(np.asarray(attn_w), np.asarray(ref_w), rtol=1e-3, atol=1e-5)

    print("KERNEL_OK")
</pallas_src>

<mosaic_0001>
module attributes {stable_mosaic.version = 11 : i64} {
  func.func @encoder_layer_kernel(%arg0: memref<16x32xf32, #tpu.memory_space<vmem>>, %arg1: memref<2x8x8xi32, #tpu.memory_space<vmem>>, %arg2: memref<8x128xf32, #tpu.memory_space<vmem>>, %arg3: memref<160x128xf32, #tpu.memory_space<vmem>>, %arg4: memref<16x32xf32, #tpu.memory_space<vmem>>, %arg5: memref<8x64xf32, #tpu.memory_space<vmem>>) attributes {dimension_semantics = [], scalar_prefetch = 0 : i64, scratch_operands = 0 : i64, tpu.core_type = #tpu.core_type<tc>} {
    %c0 = arith.constant 0 : index
    %c0_0 = arith.constant 0 : index
    %0 = vector.load %arg0[%c0, %c0_0] : memref<16x32xf32, #tpu.memory_space<vmem>>, vector<16x32xf32>
    %c0_1 = arith.constant 0 : index
    %c0_2 = arith.constant 0 : index
    %1 = vector.load %arg2[%c0_1, %c0_2] : memref<8x128xf32, #tpu.memory_space<vmem>>, vector<8x128xf32>
    %2 = vector.extract_strided_slice %1 {offsets = [0, 0], sizes = [6, 32], strides = [1, 1]} : vector<8x128xf32> to vector<6x32xf32>
    %3 = vector.extract_strided_slice %2 {offsets = [0, 0], sizes = [1, 32], strides = [1, 1]} : vector<6x32xf32> to vector<1x32xf32>
    %4 = vector.extract_strided_slice %2 {offsets = [1, 0], sizes = [1, 32], strides = [1, 1]} : vector<6x32xf32> to vector<1x32xf32>
    %5 = vector.extract_strided_slice %2 {offsets = [2, 0], sizes = [1, 32], strides = [1, 1]} : vector<6x32xf32> to vector<1x32xf32>
    %6 = vector.extract_strided_slice %2 {offsets = [3, 0], sizes = [1, 32], strides = [1, 1]} : vector<6x32xf32> to vector<1x32xf32>
    %7 = vector.extract_strided_slice %2 {offsets = [4, 0], sizes = [1, 32], strides = [1, 1]} : vector<6x32xf32> to vector<1x32xf32>
    %8 = vector.extract_strided_slice %2 {offsets = [5, 0], sizes = [1, 32], strides = [1, 1]} : vector<6x32xf32> to vector<1x32xf32>
    %9 = vector.extract_strided_slice %1 {offsets = [6, 0], sizes = [1, 96], strides = [1, 1]} : vector<8x128xf32> to vector<1x96xf32>
    %10 = vector.extract_strided_slice %1 {offsets = [7, 0], sizes = [1, 64], strides = [1, 1]} : vector<8x128xf32> to vector<1x64xf32>
    %c0_3 = arith.constant 0 : index
    %c0_4 = arith.constant 0 : index
    %11 = vector.load %arg3[%c0_3, %c0_4] : memref<160x128xf32, #tpu.memory_space<vmem>>, vector<32x96xf32>
    %c32 = arith.constant 32 : index
    %c0_5 = arith.constant 0 : index
    %12 = vector.load %arg3[%c32, %c0_5] : memref<160x128xf32, #tpu.memory_space<vmem>>, vector<32x32xf32>
    %c64 = arith.constant 64 : index
    %c0_6 = arith.constant 0 : index
    %13 = vector.load %arg3[%c64, %c0_6] : memref<160x128xf32, #tpu.memory_space<vmem>>, vector<32x64xf32>
    %c96 = arith.constant 96 : index
    %c0_7 = arith.constant 0 : index
    %14 = vector.load %arg3[%c96, %c0_7] : memref<160x128xf32, #tpu.memory_space<vmem>>, vector<64x32xf32>
    %cst = arith.constant dense<0.000000e+00> : vector<16xf32>
    %15 = vector.multi_reduction <add>, %0, %cst [1] : vector<16x32xf32> to vector<16xf32>
    %16 = vector.shape_cast %15 : vector<16xf32> to vector<16x1xf32>
    %cst_8 = arith.constant 3.200000e+01 : f32
    %17 = vector.broadcast %cst_8 : f32 to vector<16x1xf32>
    %18 = arith.divf %16, %17 : vector<16x1xf32>
    %19 = vector.broadcast %18 : vector<16x1xf32> to vector<16x32xf32>
    %20 = arith.subf %0, %19 : vector<16x32xf32>
    %21 = arith.mulf %20, %20 : vector<16x32xf32>
    %cst_9 = arith.constant dense<0.000000e+00> : vector<16xf32>
    %22 = vector.multi_reduction <add>, %21, %cst_9 [1] : vector<16x32xf32> to vector<16xf32>
    %23 = vector.shape_cast %22 : vector<16xf32> to vector<16x1xf32>
    %cst_10 = arith.constant 3.200000e+01 : f32
    %24 = vector.broadcast %cst_10 : f32 to vector<16x1xf32>
    %25 = arith.divf %23, %24 : vector<16x1xf32>
    %26 = vector.broadcast %18 : vector<16x1xf32> to vector<16x32xf32>
    %27 = arith.subf %0, %26 : vector<16x32xf32>
    %cst_11 = arith.constant 9.99999974E-6 : f32
    %28 = vector.broadcast %cst_11 : f32 to vector<16x1xf32>
    %29 = arith.addf %25, %28 : vector<16x1xf32>
    %30 = math.rsqrt %29 : vector<16x1xf32>
    %31 = vector.broadcast %30 : vector<16x1xf32> to vector<16x32xf32>
    %32 = arith.mulf %27, %31 : vector<16x32xf32>
    %33 = vector.broadcast %3 : vector<1x32xf32> to vector<16x32xf32>
    %34 = arith.mulf %32, %33 : vector<16x32xf32>
    %35 = vector.broadcast %4 : vector<1x32xf32> to vector<16x32xf32>
    %36 = arith.addf %34, %35 : vector<16x32xf32>
    %cst_12 = arith.constant dense<0.000000e+00> : vector<16x96xf32>
    %37 = tpu.matmul %36, %11, %cst_12 {dimension_numbers = #tpu.dot_dimension_numbers<[1], [0], [0], [1], [0, 0, 1, 1], [], []>} : vector<16x32xf32>, vector<32x96xf32>, vector<16x96xf32> -> vector<16x96xf32>
    %38 = vector.broadcast %9 : vector<1x96xf32> to vector<16x96xf32>
    %39 = arith.addf %37, %38 : vector<16x96xf32>
    %c0_13 = arith.constant 0 : index
    %c0_14 = arith.constant 0 : index
    %c0_15 = arith.constant 0 : index
    %40 = vector.load %arg1[%c0_13, %c0_14, %c0_15] : memref<2x8x8xi32, #tpu.memory_space<vmem>>, vector<1x8x8xi32>
    %41 = vector.shape_cast %40 : vector<1x8x8xi32> to vector<8x8xi32>
    %c0_i32 = arith.constant 0 : i32
    %42 = vector.broadcast %c0_i32 : i32 to vector<8x8xi32>
    %43 = arith.cmpi sgt, %41, %42 : vector<8x8xi32>
    %c1 = arith.constant 1 : index
    %c0_16 = arith.constant 0 : index
    %c0_17 = arith.constant 0 : index
    %44 = vector.load %arg1[%c1, %c0_16, %c0_17] : memref<2x8x8xi32, #tpu.memory_space<vmem>>, vector<1x8x8xi32>
    %45 = vector.shape_cast %44 : vector<1x8x8xi32> to vector<8x8xi32>
    %c0_i32_18 = arith.constant 0 : i32
    %46 = vector.broadcast %c0_i32_18 : i32 to vector<8x8xi32>
    %47 = arith.cmpi sgt, %45, %46 : vector<8x8xi32>
    %cst_19 = arith.constant 0.000000e+00 : f32
    %48 = vector.broadcast %cst_19 : f32 to vector<8x32xf32>
    %cst_20 = arith.constant 0.000000e+00 : f32
    %49 = vector.broadcast %cst_20 : f32 to vector<8x32xf32>
    %50 = vector.extract_strided_slice %39 {offsets = [0, 0], sizes = [16, 8], strides = [1, 1]} : vector<16x96xf32> to vector<16x8xf32>
    %51 = vector.extract_strided_slice %39 {offsets = [0, 32], sizes = [16, 8], strides = [1, 1]} : vector<16x96xf32> to vector<16x8xf32>
    %52 = vector.extract_strided_slice %39 {offsets = [0, 64], sizes = [16, 8], strides = [1, 1]} : vector<16x96xf32> to vector<16x8xf32>
    %53 = vector.extract_strided_slice %12 {offsets = [0, 0], sizes = [8, 32], strides = [1, 1]} : vector<32x32xf32> to vector<8x32xf32>
    %54 = vector.extract_strided_slice %50 {offsets = [0, 0], sizes = [8, 8], strides = [1, 1]} : vector<16x8xf32> to vector<8x8xf32>
    %55 = vector.extract_strided_slice %51 {offsets = [0, 0], sizes = [8, 8], strides = [1, 1]} : vector<16x8xf32> to vector<8x8xf32>
    %56 = vector.extract_strided_slice %52 {offsets = [0, 0], sizes = [8, 8], strides = [1, 1]} : vector<16x8xf32> to vector<8x8xf32>
    %cst_21 = arith.constant dense<0.000000e+00> : vector<8x8xf32>
    %57 = tpu.matmul %54, %55, %cst_21 {dimension_numbers = #tpu.dot_dimension_numbers<[1], [1], [0], [0], [0, 0, 1, 0], [], []>} : vector<8x8xf32>, vector<8x8xf32>, vector<8x8xf32> -> vector<8x8xf32>
    %cst_22 = arith.constant -1.000000e+09 : f32
    %58 = vector.broadcast %cst_22 : f32 to vector<8x8xf32>
    %59 = arith.select %43, %58, %57 : vector<8x8xi1>, vector<8x8xf32>
    %cst_23 = arith.constant dense<0xFF800000> : vector<8xf32>
    %60 = vector.multi_reduction <maximumf>, %59, %cst_23 [1] : vector<8x8xf32> to vector<8xf32>
    %61 = vector.shape_cast %60 : vector<8xf32> to vector<8x1xf32>
    %62 = vector.broadcast %61 : vector<8x1xf32> to vector<8x8xf32>
    %63 = arith.subf %59, %62 : vector<8x8xf32>
    %64 = math.exp %63 : vector<8x8xf32>
    %cst_24 = arith.constant dense<0.000000e+00> : vector<8xf32>
    %65 = vector.multi_reduction <add>, %64, %cst_24 [1] : vector<8x8xf32> to vector<8xf32>
    %66 = vector.shape_cast %65 : vector<8xf32> to vector<8x1xf32>
    %67 = tpu.reciprocal %66 {approx = true} : vector<8x1xf32> -> vector<8x1xf32>
    %68 = arith.mulf %66, %67 : vector<8x1xf32>
    %cst_25 = arith.constant 2.000000e+00 : f32
    %69 = vector.broadcast %cst_25 : f32 to vector<8x1xf32>
    %70 = arith.subf %69, %68 : vector<8x1xf32>
    %71 = arith.mulf %67, %70 : vector<8x1xf32>
    %72 = vector.broadcast %71 : vector<8x1xf32> to vector<8x8xf32>
    %73 = arith.mulf %64, %72 : vector<8x8xf32>
    %cst_26 = arith.constant dense<0.000000e+00> : vector<8x8xf32>
    %74 = tpu.matmul %73, %56, %cst_26 {dimension_numbers = #tpu.dot_dimension_numbers<[1], [0], [0], [1], [0, 0, 1, 1], [], []>} : vector<8x8xf32>, vector<8x8xf32>, vector<8x8xf32> -> vector<8x8xf32>
    %cst_27 = arith.constant dense<0.000000e+00> : vector<8x32xf32>
    %75 = tpu.matmul %74, %53, %cst_27 {dimension_numbers = #tpu.dot_dimension_numbers<[1], [0], [0], [1], [0, 0, 1, 1], [], []>} : vector<8x8xf32>, vector<8x32xf32>, vector<8x32xf32> -> vector<8x32xf32>
    %76 = arith.addf %48, %75 : vector<8x32xf32>
    %77 = vector.extract_strided_slice %50 {offsets = [8, 0], sizes = [8, 8], strides = [1, 1]} : vector<16x8xf32> to vector<8x8xf32>
    %78 = vector.extract_strided_slice %51 {offsets = [8, 0], sizes = [8, 8], strides = [1, 1]} : vector<16x8xf32> to vector<8x8xf32>
    %79 = vector.extract_strided_slice %52 {offsets = [8, 0], sizes = [8, 8], strides = [1, 1]} : vector<16x8xf32> to vector<8x8xf32>
    %cst_28 = arith.constant dense<0.000000e+00> : vector<8x8xf32>
    %80 = tpu.matmul %77, %78, %cst_28 {dimension_numbers = #tpu.dot_dimension_numbers<[1], [1], [0], [0], [0, 0, 1, 0], [], []>} : vector<8x8xf32>, vector<8x8xf32>, vector<8x8xf32> -> vector<8x8xf32>
    %cst_29 = arith.constant -1.000000e+09 : f32
    %81 = vector.broadcast %cst_29 : f32 to vector<8x8xf32>
    %82 = arith.select %47, %81, %80 : vector<8x8xi1>, vector<8x8xf32>
    %cst_30 = arith.constant dense<0xFF800000> : vector<8xf32>
    %83 = vector.multi_reduction <maximumf>, %82, %cst_30 [1] : vector<8x8xf32> to vector<8xf32>
    %84 = vector.shape_cast %83 : vector<8xf32> to vector<8x1xf32>
    %85 = vector.broadcast %84 : vector<8x1xf32> to vector<8x8xf32>
    %86 = arith.subf %82, %85 : vector<8x8xf32>
    %87 = math.exp %86 : vector<8x8xf32>
    %cst_31 = arith.constant dense<0.000000e+00> : vector<8xf32>
    %88 = vector.multi_reduction <add>, %87, %cst_31 [1] : vector<8x8xf32> to vector<8xf32>
    %89 = vector.shape_cast %88 : vector<8xf32> to vector<8x1xf32>
    %90 = tpu.reciprocal %89 {approx = true} : vector<8x1xf32> -> vector<8x1xf32>
    %91 = arith.mulf %89, %90 : vector<8x1xf32>
    %cst_32 = arith.constant 2.000000e+00 : f32
    %92 = vector.broadcast %cst_32 : f32 to vector<8x1xf32>
    %93 = arith.subf %92, %91 : vector<8x1xf32>
    %94 = arith.mulf %90, %93 : vector<8x1xf32>
    %95 = vector.broadcast %94 : vector<8x1xf32> to vector<8x8xf32>
    %96 = arith.mulf %87, %95 : vector<8x8xf32>
    %cst_33 = arith.constant dense<0.000000e+00> : vector<8x8xf32>
    %97 = tpu.matmul %96, %79, %cst_33 {dimension_numbers = #tpu.dot_dimension_numbers<[1], [0], [0], [1], [0, 0, 1, 1], [], []>} : vector<8x8xf32>, vector<8x8xf32>, vector<8x8xf32> -> vector<8x8xf32>
    %cst_34 = arith.constant dense<0.000000e+00> : vector<8x32xf32>
    %98 = tpu.matmul %97, %53, %cst_34 {dimension_numbers = #tpu.dot_dimension_numbers<[1], [0], [0], [1], [0, 0, 1, 1], [], []>} : vector<8x8xf32>, vector<8x32xf32>, vector<8x32xf32> -> vector<8x32xf32>
    %99 = arith.addf %49, %98 : vector<8x32xf32>
    %100 = vector.extract_strided_slice %39 {offsets = [0, 8], sizes = [16, 8], strides = [1, 1]} : vector<16x96xf32> to vector<16x8xf32>
    %101 = vector.extract_strided_slice %39 {offsets = [0, 40], sizes = [16, 8], strides = [1, 1]} : vector<16x96xf32> to vector<16x8xf32>
    %102 = vector.extract_strided_slice %39 {offsets = [0, 72], sizes = [16, 8], strides = [1, 1]} : vector<16x96xf32> to vector<16x8xf32>
    %103 = vector.extract_strided_slice %12 {offsets = [8, 0], sizes = [8, 32], strides = [1, 1]} : vector<32x32xf32> to vector<8x32xf32>
    %104 = vector.extract_strided_slice %100 {offsets = [0, 0], sizes = [8, 8], strides = [1, 1]} : vector<16x8xf32> to vector<8x8xf32>
    %105 = vector.extract_strided_slice %101 {offsets = [0, 0], sizes = [8, 8], strides = [1, 1]} : vector<16x8xf32> to vector<8x8xf32>
    %106 = vector.extract_strided_slice %102 {offsets = [0, 0], sizes = [8, 8], strides = [1, 1]} : vector<16x8xf32> to vector<8x8xf32>
    %cst_35 = arith.constant dense<0.000000e+00> : vector<8x8xf32>
    %107 = tpu.matmul %104, %105, %cst_35 {dimension_numbers = #tpu.dot_dimension_numbers<[1], [1], [0], [0], [0, 0, 1, 0], [], []>} : vector<8x8xf32>, vector<8x8xf32>, vector<8x8xf32> -> vector<8x8xf32>
    %cst_36 = arith.constant -1.000000e+09 : f32
    %108 = vector.broadcast %cst_36 : f32 to vector<8x8xf32>
    %109 = arith.select %43, %108, %107 : vector<8x8xi1>, vector<8x8xf32>
    %cst_37 = arith.constant dense<0xFF800000> : vector<8xf32>
    %110 = vector.multi_reduction <maximumf>, %109, %cst_37 [1] : vector<8x8xf32> to vector<8xf32>
    %111 = vector.shape_cast %110 : vector<8xf32> to vector<8x1xf32>
    %112 = vector.broadcast %111 : vector<8x1xf32> to vector<8x8xf32>
    %113 = arith.subf %109, %112 : vector<8x8xf32>
    %114 = math.exp %113 : vector<8x8xf32>
    %cst_38 = arith.constant dense<0.000000e+00> : vector<8xf32>
    %115 = vector.multi_reduction <add>, %114, %cst_38 [1] : vector<8x8xf32> to vector<8xf32>
    %116 = vector.shape_cast %115 : vector<8xf32> to vector<8x1xf32>
    %117 = tpu.reciprocal %116 {approx = true} : vector<8x1xf32> -> vector<8x1xf32>
    %118 = arith.mulf %116, %117 : vector<8x1xf32>
    %cst_39 = arith.constant 2.000000e+00 : f32
    %119 = vector.broadcast %cst_39 : f32 to vector<8x1xf32>
    %120 = arith.subf %119, %118 : vector<8x1xf32>
    %121 = arith.mulf %117, %120 : vector<8x1xf32>
    %122 = vector.broadcast %121 : vector<8x1xf32> to vector<8x8xf32>
    %123 = arith.mulf %114, %122 : vector<8x8xf32>
    %cst_40 = arith.constant dense<0.000000e+00> : vector<8x8xf32>
    %124 = tpu.matmul %123, %106, %cst_40 {dimension_numbers = #tpu.dot_dimension_numbers<[1], [0], [0], [1], [0, 0, 1, 1], [], []>} : vector<8x8xf32>, vector<8x8xf32>, vector<8x8xf32> -> vector<8x8xf32>
    %cst_41 = arith.constant dense<0.000000e+00> : vector<8x32xf32>
    %125 = tpu.matmul %124, %103, %cst_41 {dimension_numbers = #tpu.dot_dimension_numbers<[1], [0], [0], [1], [0, 0, 1, 1], [], []>} : vector<8x8xf32>, vector<8x32xf32>, vector<8x32xf32> -> vector<8x32xf32>
    %126 = arith.addf %76, %125 : vector<8x32xf32>
    %127 = vector.extract_strided_slice %100 {offsets = [8, 0], sizes = [8, 8], strides = [1, 1]} : vector<16x8xf32> to vector<8x8xf32>
    %128 = vector.extract_strided_slice %101 {offsets = [8, 0], sizes = [8, 8], strides = [1, 1]} : vector<16x8xf32> to vector<8x8xf32>
    %129 = vector.extract_strided_slice %102 {offsets = [8, 0], sizes = [8, 8], strides = [1, 1]} : vector<16x8xf32> to vector<8x8xf32>
    %cst_42 = arith.constant dense<0.000000e+00> : vector<8x8xf32>
    %130 = tpu.matmul %127, %128, %cst_42 {dimension_numbers = #tpu.dot_dimension_numbers<[1], [1], [0], [0], [0, 0, 1, 0], [], []>} : vector<8x8xf32>, vector<8x8xf32>, vector<8x8xf32> -> vector<8x8xf32>
    %cst_43 = arith.constant -1.000000e+09 : f32
    %131 = vector.broadcast %cst_43 : f32 to vector<8x8xf32>
    %132 = arith.select %47, %131, %130 : vector<8x8xi1>, vector<8x8xf32>
    %cst_44 = arith.constant dense<0xFF800000> : vector<8xf32>
    %133 = vector.multi_reduction <maximumf>, %132, %cst_44 [1] : vector<8x8xf32> to vector<8xf32>
    %134 = vector.shape_cast %133 : vector<8xf32> to vector<8x1xf32>
    %135 = vector.broadcast %134 : vector<8x1xf32> to vector<8x8xf32>
    %136 = arith.subf %132, %135 : vector<8x8xf32>
    %137 = math.exp %136 : vector<8x8xf32>
    %cst_45 = arith.constant dense<0.000000e+00> : vector<8xf32>
    %138 = vector.multi_reduction <add>, %137, %cst_45 [1] : vector<8x8xf32> to vector<8xf32>
    %139 = vector.shape_cast %138 : vector<8xf32> to vector<8x1xf32>
    %140 = tpu.reciprocal %139 {approx = true} : vector<8x1xf32> -> vector<8x1xf32>
    %141 = arith.mulf %139, %140 : vector<8x1xf32>
    %cst_46 = arith.constant 2.000000e+00 : f32
    %142 = vector.broadcast %cst_46 : f32 to vector<8x1xf32>
    %143 = arith.subf %142, %141 : vector<8x1xf32>
    %144 = arith.mulf %140, %143 : vector<8x1xf32>
    %145 = vector.broadcast %144 : vector<8x1xf32> to vector<8x8xf32>
    %146 = arith.mulf %137, %145 : vector<8x8xf32>
    %cst_47 = arith.constant dense<0.000000e+00> : vector<8x8xf32>
    %147 = tpu.matmul %146, %129, %cst_47 {dimension_numbers = #tpu.dot_dimension_numbers<[1], [0], [0], [1], [0, 0, 1, 1], [], []>} : vector<8x8xf32>, vector<8x8xf32>, vector<8x8xf32> -> vector<8x8xf32>
    %cst_48 = arith.constant dense<0.000000e+00> : vector<8x32xf32>
    %148 = tpu.matmul %147, %103, %cst_48 {dimension_numbers = #tpu.dot_dimension_numbers<[1], [0], [0], [1], [0, 0, 1, 1], [], []>} : vector<8x8xf32>, vector<8x32xf32>, vector<8x32xf32> -> vector<8x32xf32>
    %149 = arith.addf %99, %148 : vector<8x32xf32>
    %150 = vector.extract_strided_slice %39 {offsets = [0, 16], sizes = [16, 8], strides = [1, 1]} : vector<16x96xf32> to vector<16x8xf32>
    %151 = vector.extract_strided_slice %39 {offsets = [0, 48], sizes = [16, 8], strides = [1, 1]} : vector<16x96xf32> to vector<16x8xf32>
    %152 = vector.extract_strided_slice %39 {offsets = [0, 80], sizes = [16, 8], strides = [1, 1]} : vector<16x96xf32> to vector<16x8xf32>
    %153 = vector.extract_strided_slice %12 {offsets = [16, 0], sizes = [8, 32], strides = [1, 1]} : vector<32x32xf32> to vector<8x32xf32>
    %154 = vector.extract_strided_slice %150 {offsets = [0, 0], sizes = [8, 8], strides = [1, 1]} : vector<16x8xf32> to vector<8x8xf32>
    %155 = vector.extract_strided_slice %151 {offsets = [0, 0], sizes = [8, 8], strides = [1, 1]} : vector<16x8xf32> to vector<8x8xf32>
    %156 = vector.extract_strided_slice %152 {offsets = [0, 0], sizes = [8, 8], strides = [1, 1]} : vector<16x8xf32> to vector<8x8xf32>
    %cst_49 = arith.constant dense<0.000000e+00> : vector<8x8xf32>
    %157 = tpu.matmul %154, %155, %cst_49 {dimension_numbers = #tpu.dot_dimension_numbers<[1], [1], [0], [0], [0, 0, 1, 0], [], []>} : vector<8x8xf32>, vector<8x8xf32>, vector<8x8xf32> -> vector<8x8xf32>
    %cst_50 = arith.constant -1.000000e+09 : f32
    %158 = vector.broadcast %cst_50 : f32 to vector<8x8xf32>
    %159 = arith.select %43, %158, %157 : vector<8x8xi1>, vector<8x8xf32>
    %cst_51 = arith.constant dense<0xFF800000> : vector<8xf32>
    %160 = vector.multi_reduction <maximumf>, %159, %cst_51 [1] : vector<8x8xf32> to vector<8xf32>
    %161 = vector.shape_cast %160 : vector<8xf32> to vector<8x1xf32>
    %162 = vector.broadcast %161 : vector<8x1xf32> to vector<8x8xf32>
    %163 = arith.subf %159, %162 : vector<8x8xf32>
    %164 = math.exp %163 : vector<8x8xf32>
    %cst_52 = arith.constant dense<0.000000e+00> : vector<8xf32>
    %165 = vector.multi_reduction <add>, %164, %cst_52 [1] : vector<8x8xf32> to vector<8xf32>
    %166 = vector.shape_cast %165 : vector<8xf32> to vector<8x1xf32>
    %167 = tpu.reciprocal %166 {approx = true} : vector<8x1xf32> -> vector<8x1xf32>
    %168 = arith.mulf %166, %167 : vector<8x1xf32>
    %cst_53 = arith.constant 2.000000e+00 : f32
    %169 = vector.broadcast %cst_53 : f32 to vector<8x1xf32>
    %170 = arith.subf %169, %168 : vector<8x1xf32>
    %171 = arith.mulf %167, %170 : vector<8x1xf32>
    %172 = vector.broadcast %171 : vector<8x1xf32> to vector<8x8xf32>
    %173 = arith.mulf %164, %172 : vector<8x8xf32>
    %cst_54 = arith.constant dense<0.000000e+00> : vector<8x8xf32>
    %174 = tpu.matmul %173, %156, %cst_54 {dimension_numbers = #tpu.dot_dimension_numbers<[1], [0], [0], [1], [0, 0, 1, 1], [], []>} : vector<8x8xf32>, vector<8x8xf32>, vector<8x8xf32> -> vector<8x8xf32>
    %cst_55 = arith.constant dense<0.000000e+00> : vector<8x32xf32>
    %175 = tpu.matmul %174, %153, %cst_55 {dimension_numbers = #tpu.dot_dimension_numbers<[1], [0], [0], [1], [0, 0, 1, 1], [], []>} : vector<8x8xf32>, vector<8x32xf32>, vector<8x32xf32> -> vector<8x32xf32>
    %176 = arith.addf %126, %175 : vector<8x32xf32>
    %177 = vector.extract_strided_slice %150 {offsets = [8, 0], sizes = [8, 8], strides = [1, 1]} : vector<16x8xf32> to vector<8x8xf32>
    %178 = vector.extract_strided_slice %151 {offsets = [8, 0], sizes = [8, 8], strides = [1, 1]} : vector<16x8xf32> to vector<8x8xf32>
    %179 = vector.extract_strided_slice %152 {offsets = [8, 0], sizes = [8, 8], strides = [1, 1]} : vector<16x8xf32> to vector<8x8xf32>
    %cst_56 = arith.constant dense<0.000000e+00> : vector<8x8xf32>
    %180 = tpu.matmul %177, %178, %cst_56 {dimension_numbers = #tpu.dot_dimension_numbers<[1], [1], [0], [0], [0, 0, 1, 0], [], []>} : vector<8x8xf32>, vector<8x8xf32>, vector<8x8xf32> -> vector<8x8xf32>
    %cst_57 = arith.constant -1.000000e+09 : f32
    %181 = vector.broadcast %cst_57 : f32 to vector<8x8xf32>
    %182 = arith.select %47, %181, %180 : vector<8x8xi1>, vector<8x8xf32>
    %cst_58 = arith.constant dense<0xFF800000> : vector<8xf32>
    %183 = vector.multi_reduction <maximumf>, %182, %cst_58 [1] : vector<8x8xf32> to vector<8xf32>
    %184 = vector.shape_cast %183 : vector<8xf32> to vector<8x1xf32>
    %185 = vector.broadcast %184 : vector<8x1xf32> to vector<8x8xf32>
    %186 = arith.subf %182, %185 : vector<8x8xf32>
    %187 = math.exp %186 : vector<8x8xf32>
    %cst_59 = arith.constant dense<0.000000e+00> : vector<8xf32>
    %188 = vector.multi_reduction <add>, %187, %cst_59 [1] : vector<8x8xf32> to vector<8xf32>
    %189 = vector.shape_cast %188 : vector<8xf32> to vector<8x1xf32>
    %190 = tpu.reciprocal %189 {approx = true} : vector<8x1xf32> -> vector<8x1xf32>
    %191 = arith.mulf %189, %190 : vector<8x1xf32>
    %cst_60 = arith.constant 2.000000e+00 : f32
    %192 = vector.broadcast %cst_60 : f32 to vector<8x1xf32>
    %193 = arith.subf %192, %191 : vector<8x1xf32>
    %194 = arith.mulf %190, %193 : vector<8x1xf32>
    %195 = vector.broadcast %194 : vector<8x1xf32> to vector<8x8xf32>
    %196 = arith.mulf %187, %195 : vector<8x8xf32>
    %cst_61 = arith.constant dense<0.000000e+00> : vector<8x8xf32>
    %197 = tpu.matmul %196, %179, %cst_61 {dimension_numbers = #tpu.dot_dimension_numbers<[1], [0], [0], [1], [0, 0, 1, 1], [], []>} : vector<8x8xf32>, vector<8x8xf32>, vector<8x8xf32> -> vector<8x8xf32>
    %cst_62 = arith.constant dense<0.000000e+00> : vector<8x32xf32>
    %198 = tpu.matmul %197, %153, %cst_62 {dimension_numbers = #tpu.dot_dimension_numbers<[1], [0], [0], [1], [0, 0, 1, 1], [], []>} : vector<8x8xf32>, vector<8x32xf32>, vector<8x32xf32> -> vector<8x32xf32>
    %199 = arith.addf %149, %198 : vector<8x32xf32>
    %200 = vector.extract_strided_slice %39 {offsets = [0, 24], sizes = [16, 8], strides = [1, 1]} : vector<16x96xf32> to vector<16x8xf32>
    %201 = vector.extract_strided_slice %39 {offsets = [0, 56], sizes = [16, 8], strides = [1, 1]} : vector<16x96xf32> to vector<16x8xf32>
    %202 = vector.extract_strided_slice %39 {offsets = [0, 88], sizes = [16, 8], strides = [1, 1]} : vector<16x96xf32> to vector<16x8xf32>
    %203 = vector.extract_strided_slice %12 {offsets = [24, 0], sizes = [8, 32], strides = [1, 1]} : vector<32x32xf32> to vector<8x32xf32>
    %204 = vector.extract_strided_slice %200 {offsets = [0, 0], sizes = [8, 8], strides = [1, 1]} : vector<16x8xf32> to vector<8x8xf32>
    %205 = vector.extract_strided_slice %201 {offsets = [0, 0], sizes = [8, 8], strides = [1, 1]} : vector<16x8xf32> to vector<8x8xf32>
    %206 = vector.extract_strided_slice %202 {offsets = [0, 0], sizes = [8, 8], strides = [1, 1]} : vector<16x8xf32> to vector<8x8xf32>
    %cst_63 = arith.constant dense<0.000000e+00> : vector<8x8xf32>
    %207 = tpu.matmul %204, %205, %cst_63 {dimension_numbers = #tpu.dot_dimension_numbers<[1], [1], [0], [0], [0, 0, 1, 0], [], []>} : vector<8x8xf32>, vector<8x8xf32>, vector<8x8xf32> -> vector<8x8xf32>
    %cst_64 = arith.constant -1.000000e+09 : f32
    %208 = vector.broadcast %cst_64 : f32 to vector<8x8xf32>
    %209 = arith.select %43, %208, %207 : vector<8x8xi1>, vector<8x8xf32>
    %cst_65 = arith.constant dense<0xFF800000> : vector<8xf32>
    %210 = vector.multi_reduction <maximumf>, %209, %cst_65 [1] : vector<8x8xf32> to vector<8xf32>
    %211 = vector.shape_cast %210 : vector<8xf32> to vector<8x1xf32>
    %212 = vector.broadcast %211 : vector<8x1xf32> to vector<8x8xf32>
    %213 = arith.subf %209, %212 : vector<8x8xf32>
    %214 = math.exp %213 : vector<8x8xf32>
    %cst_66 = arith.constant dense<0.000000e+00> : vector<8xf32>
    %215 = vector.multi_reduction <add>, %214, %cst_66 [1] : vector<8x8xf32> to vector<8xf32>
    %216 = vector.shape_cast %215 : vector<8xf32> to vector<8x1xf32>
    %217 = tpu.reciprocal %216 {approx = true} : vector<8x1xf32> -> vector<8x1xf32>
    %218 = arith.mulf %216, %217 : vector<8x1xf32>
    %cst_67 = arith.constant 2.000000e+00 : f32
    %219 = vector.broadcast %cst_67 : f32 to vector<8x1xf32>
    %220 = arith.subf %219, %218 : vector<8x1xf32>
    %221 = arith.mulf %217, %220 : vector<8x1xf32>
    %222 = vector.broadcast %221 : vector<8x1xf32> to vector<8x8xf32>
    %223 = arith.mulf %214, %222 : vector<8x8xf32>
    %cst_68 = arith.constant dense<0.000000e+00> : vector<8x8xf32>
    %224 = tpu.matmul %223, %206, %cst_68 {dimension_numbers = #tpu.dot_dimension_numbers<[1], [0], [0], [1], [0, 0, 1, 1], [], []>} : vector<8x8xf32>, vector<8x8xf32>, vector<8x8xf32> -> vector<8x8xf32>
    %cst_69 = arith.constant dense<0.000000e+00> : vector<8x32xf32>
    %225 = tpu.matmul %224, %203, %cst_69 {dimension_numbers = #tpu.dot_dimension_numbers<[1], [0], [0], [1], [0, 0, 1, 1], [], []>} : vector<8x8xf32>, vector<8x32xf32>, vector<8x32xf32> -> vector<8x32xf32>
    %226 = arith.addf %176, %225 : vector<8x32xf32>
    %227 = vector.extract_strided_slice %200 {offsets = [8, 0], sizes = [8, 8], strides = [1, 1]} : vector<16x8xf32> to vector<8x8xf32>
    %228 = vector.extract_strided_slice %201 {offsets = [8, 0], sizes = [8, 8], strides = [1, 1]} : vector<16x8xf32> to vector<8x8xf32>
    %229 = vector.extract_strided_slice %202 {offsets = [8, 0], sizes = [8, 8], strides = [1, 1]} : vector<16x8xf32> to vector<8x8xf32>
    %cst_70 = arith.constant dense<0.000000e+00> : vector<8x8xf32>
    %230 = tpu.matmul %227, %228, %cst_70 {dimension_numbers = #tpu.dot_dimension_numbers<[1], [1], [0], [0], [0, 0, 1, 0], [], []>} : vector<8x8xf32>, vector<8x8xf32>, vector<8x8xf32> -> vector<8x8xf32>
    %cst_71 = arith.constant -1.000000e+09 : f32
    %231 = vector.broadcast %cst_71 : f32 to vector<8x8xf32>
    %232 = arith.select %47, %231, %230 : vector<8x8xi1>, vector<8x8xf32>
    %cst_72 = arith.constant dense<0xFF800000> : vector<8xf32>
    %233 = vector.multi_reduction <maximumf>, %232, %cst_72 [1] : vector<8x8xf32> to vector<8xf32>
    %234 = vector.shape_cast %233 : vector<8xf32> to vector<8x1xf32>
    %235 = vector.broadcast %234 : vector<8x1xf32> to vector<8x8xf32>
    %236 = arith.subf %232, %235 : vector<8x8xf32>
    %237 = math.exp %236 : vector<8x8xf32>
    %cst_73 = arith.constant dense<0.000000e+00> : vector<8xf32>
    %238 = vector.multi_reduction <add>, %237, %cst_73 [1] : vector<8x8xf32> to vector<8xf32>
    %239 = vector.shape_cast %238 : vector<8xf32> to vector<8x1xf32>
    %240 = tpu.reciprocal %239 {approx = true} : vector<8x1xf32> -> vector<8x1xf32>
    %241 = arith.mulf %239, %240 : vector<8x1xf32>
    %cst_74 = arith.constant 2.000000e+00 : f32
    %242 = vector.broadcast %cst_74 : f32 to vector<8x1xf32>
    %243 = arith.subf %242, %241 : vector<8x1xf32>
    %244 = arith.mulf %240, %243 : vector<8x1xf32>
    %245 = vector.broadcast %244 : vector<8x1xf32> to vector<8x8xf32>
    %246 = arith.mulf %237, %245 : vector<8x8xf32>
    %cst_75 = arith.constant dense<0.000000e+00> : vector<8x8xf32>
    %247 = tpu.matmul %246, %229, %cst_75 {dimension_numbers = #tpu.dot_dimension_numbers<[1], [0], [0], [1], [0, 0, 1, 1], [], []>} : vector<8x8xf32>, vector<8x8xf32>, vector<8x8xf32> -> vector<8x8xf32>
    %cst_76 = arith.constant dense<0.000000e+00> : vector<8x32xf32>
    %248 = tpu.matmul %247, %203, %cst_76 {dimension_numbers = #tpu.dot_dimension_numbers<[1], [0], [0], [1], [0, 0, 1, 1], [], []>} : vector<8x8xf32>, vector<8x32xf32>, vector<8x32xf32> -> vector<8x32xf32>
    %249 = arith.addf %199, %248 : vector<8x32xf32>
    %250 = tpu.concatenate %73, %123, %173, %223, %96, %146, %196, %246 in 1 : vector<8x8xf32>, vector<8x8xf32>, vector<8x8xf32>, vector<8x8xf32>, vector<8x8xf32>, vector<8x8xf32>, vector<8x8xf32>, vector<8x8xf32> -> vector<8x64xf32>
    %c0_77 = arith.constant 0 : index
    %c0_78 = arith.constant 0 : index
    %251 = vector.load %arg5[%c0_77, %c0_78] : memref<8x64xf32, #tpu.memory_space<vmem>>, vector<8x64xf32>
    tpu.vector_store %arg5[%c0_77, %c0_78], %250 {strides = array<i32>} : memref<8x64xf32, #tpu.memory_space<vmem>>, vector<8x64xf32>,
    %252 = tpu.concatenate %226, %249 in 0 : vector<8x32xf32>, vector<8x32xf32> -> vector<16x32xf32>
    %253 = vector.broadcast %7 : vector<1x32xf32> to vector<16x32xf32>
    %254 = arith.addf %252, %253 : vector<16x32xf32>
    %255 = arith.addf %0, %254 : vector<16x32xf32>
    %cst_79 = arith.constant dense<0.000000e+00> : vector<16xf32>
    %256 = vector.multi_reduction <add>, %255, %cst_79 [1] : vector<16x32xf32> to vector<16xf32>
    %257 = vector.shape_cast %256 : vector<16xf32> to vector<16x1xf32>
    %cst_80 = arith.constant 3.200000e+01 : f32
    %258 = vector.broadcast %cst_80 : f32 to vector<16x1xf32>
    %259 = arith.divf %257, %258 : vector<16x1xf32>
    %260 = vector.broadcast %259 : vector<16x1xf32> to vector<16x32xf32>
    %261 = arith.subf %255, %260 : vector<16x32xf32>
    %262 = arith.mulf %261, %261 : vector<16x32xf32>
    %cst_81 = arith.constant dense<0.000000e+00> : vector<16xf32>
    %263 = vector.multi_reduction <add>, %262, %cst_81 [1] : vector<16x32xf32> to vector<16xf32>
    %264 = vector.shape_cast %263 : vector<16xf32> to vector<16x1xf32>
    %cst_82 = arith.constant 3.200000e+01 : f32
    %265 = vector.broadcast %cst_82 : f32 to vector<16x1xf32>
    %266 = arith.divf %264, %265 : vector<16x1xf32>
    %267 = vector.broadcast %259 : vector<16x1xf32> to vector<16x32xf32>
    %268 = arith.subf %255, %267 : vector<16x32xf32>
    %cst_83 = arith.constant 9.99999974E-6 : f32
    %269 = vector.broadcast %cst_83 : f32 to vector<16x1xf32>
    %270 = arith.addf %266, %269 : vector<16x1xf32>
    %271 = math.rsqrt %270 : vector<16x1xf32>
    %272 = vector.broadcast %271 : vector<16x1xf32> to vector<16x32xf32>
    %273 = arith.mulf %268, %272 : vector<16x32xf32>
    %274 = vector.broadcast %5 : vector<1x32xf32> to vector<16x32xf32>
    %275 = arith.mulf %273, %274 : vector<16x32xf32>
    %276 = vector.broadcast %6 : vector<1x32xf32> to vector<16x32xf32>
    %277 = arith.addf %275, %276 : vector<16x32xf32>
    %cst_84 = arith.constant dense<0.000000e+00> : vector<16x64xf32>
    %278 = tpu.matmul %277, %13, %cst_84 {dimension_numbers = #tpu.dot_dimension_numbers<[1], [0], [0], [1], [0, 0, 1, 1], [], []>} : vector<16x32xf32>, vector<32x64xf32>, vector<16x64xf32> -> vector<16x64xf32>
    %279 = vector.broadcast %10 : vector<1x64xf32> to vector<16x64xf32>
    %280 = arith.addf %278, %279 : vector<16x64xf32>
    %cst_85 = arith.constant 0.000000e+00 : f32
    %281 = vector.broadcast %cst_85 : f32 to vector<16x64xf32>
    %282 = arith.maximumf %280, %281 : vector<16x64xf32>
    %cst_86 = arith.constant dense<0.000000e+00> : vector<16x32xf32>
    %283 = tpu.matmul %282, %14, %cst_86 {dimension_numbers = #tpu.dot_dimension_numbers<[1], [0], [0], [1], [0, 0, 1, 1], [], []>} : vector<16x64xf32>, vector<64x32xf32>, vector<16x32xf32> -> vector<16x32xf32>
    %284 = vector.broadcast %8 : vector<1x32xf32> to vector<16x32xf32>
    %285 = arith.addf %283, %284 : vector<16x32xf32>
    %286 = arith.addf %277, %285 : vector<16x32xf32>
    %c0_87 = arith.constant 0 : index
    %c0_88 = arith.constant 0 : index
    %287 = vector.load %arg4[%c0_87, %c0_88] : memref<16x32xf32, #tpu.memory_space<vmem>>, vector<16x32xf32>
    tpu.vector_store %arg4[%c0_87, %c0_88], %286 {strides = array<i32>} : memref<16x32xf32, #tpu.memory_space<vmem>>, vector<16x32xf32>,
    return
  }
}

</mosaic_0001>

<bundles_post_ra>
// kernel: encoder_layer.1
= control target key start
LH: loop header
LB: loop body
LE: loop exit
PB: predicated region body
PF: predicated region fallthrough
CT: control target
= control target key end

     0   :  { %11 = vsyncpa [#allocation3], 0  ;;  %s3257_s0 = inlined_call_operand.hbm [shape: f32[16,32], index: 0, kind: input, shape index: {}]   ;;  %s3258_s1 = inlined_call_operand.hbm [shape: s32[2,8,8], index: 1, kind: input, shape index: {}]   ;;  %s3259_s2 = inlined_call_operand.hbm [shape: f32[8,128], index: 2, kind: input, shape index: {}]   ;;  %s3260_s3 = inlined_call_operand.hbm [shape: f32[160,128], index: 3, kind: input, shape index: {}]   ;;  %s3261_s4 = inlined_call_operand.hbm [shape: f32[16,32], index: 4, kind: output, shape index: {0}]   ;;  %s3262_s5 = inlined_call_operand.vmem [shape: f32[8,64], index: 5, kind: output, shape index: {1}]  }
   0x1   :  { %12 = vsyncpa [#allocation6], 0 }
   0x2   :  { %13 = vsyncpa [#allocation9], 0 }
   0x3   :  { %14 = vsyncpa [#allocation4], 0  ;;  %s2885_s18 = smov [#allocation5]   ;;  %s2886_s20 = smov [#allocation2]  }
   0x4   :  { %s32_s19 = sshll.u32 %s2885_s18, 4  ;;  %s20_s21 = sshll.u32 %s2886_s20, 4  ;;  %s33_s19 = int_to_ptr.vmem [resolvable:$true] %s32_s19  ;;  %s21_s21 = int_to_ptr.vmem [resolvable:$true] %s20_s21 }
   0x5   :  { %s2785_s22 = scalar_lea.vmem %s33_s19, 256  ;;  %p2790_p1 = scmp.lt.s32.totalorder %s33_s19, %s33_s19 }
   0x6   :  { %p2786_p0 = scmp.ne.s32.totalorder %s33_s19, %s2785_s22  ;;  %p2791_p2 = scmp.lt.s32.totalorder %s2785_s22, %s2785_s22 }
   0x8   :  { %p2792_p3 = por %p2791_p2, %p2790_p1 }
   0xa   :  { %p2793_p4 = pnand %p2792_p3, %p2786_p0 }
   0xc   :  { %2796 = shalt.err (!%p2793_p4)
}
   0xd   :  { %s2887_s23 = smov 128   ;;  %s2888_s24 = smov 8  }
   0xe   :  { %38 = dma.hbm_to_vmem [thread:$0]  %s3258_s1, 256, %s33_s19, [#allocation6], %s2887_s23, %s2887_s23, %s2888_s24  }
   0xf   :  { %s2805_s27 = scalar_lea.vmem %s21_s21, 256  ;;  %p2810_p6 = scmp.lt.s32.totalorder %s21_s21, %s21_s21 }
  0x10   :  { %p2806_p5 = scmp.ne.s32.totalorder %s21_s21, %s2805_s27  ;;  %p2811_p7 = scmp.lt.s32.totalorder %s2805_s27, %s2805_s27 }
  0x12   :  { %p2812_p8 = por %p2811_p7, %p2810_p6 }
  0x14   :  { %p2813_p9 = pnand %p2812_p8, %p2806_p5 }
  0x16   :  { %2816 = shalt.err (!%p2813_p9)
}
  0x17   :  { %26 = dma.hbm_to_vmem [thread:$0]  %s3257_s0, 256, %s21_s21, [#allocation3], %s2887_s23, %s2887_s23, %s2888_s24  }
  0x18   :  { %s2889_s30 = smov [#allocation7]   ;;  %s2890_s7 = smov [#allocation8]  }
  0x19   :  { %s45_s6 = sshll.u32 %s2889_s30, 4  ;;  %s54_s8 = sshll.u32 %s2890_s7, 4  ;;  %s46_s6 = int_to_ptr.vmem [resolvable:$true] %s45_s6  ;;  %s55_s8 = int_to_ptr.vmem [resolvable:$true] %s54_s8 }
  0x1a   :  { %s2825_s1 = scalar_lea.vmem %s46_s6, 128  ;;  %p2830_p11 = scmp.lt.s32.totalorder %s46_s6, %s46_s6 }
  0x1b   :  { %p2826_p10 = scmp.ne.s32.totalorder %s46_s6, %s2825_s1  ;;  %p2831_p12 = scmp.lt.s32.totalorder %s2825_s1, %s2825_s1 }
  0x1d   :  { %p2832_p13 = por %p2831_p12, %p2830_p11 }
  0x1f   :  { %p2833_p0 = pnand %p2832_p13, %p2826_p10 }
  0x21   :  { %2836 = shalt.err (!%p2833_p0)
}
  0x22   :  { %48 = dma.hbm_to_vmem [thread:$0]  %s3259_s2, 128, %s46_s6, [#allocation6]  }
  0x23   :  { %s2845_s11 = scalar_lea.vmem %s55_s8, 2560  ;;  %p2850_p2 = scmp.lt.s32.totalorder %s55_s8, %s55_s8 }
  0x24   :  { %p2846_p1 = scmp.ne.s32.totalorder %s55_s8, %s2845_s11  ;;  %p2851_p3 = scmp.lt.s32.totalorder %s2845_s11, %s2845_s11 }
  0x26   :  { %p2852_p4 = por %p2851_p3, %p2850_p2 }
  0x28   :  { %p2853_p5 = pnand %p2852_p4, %p2846_p1 }
  0x2a   :  { %2856 = shalt.err (!%p2853_p5)
}
  0x2b   :  { %60 = dma.hbm_to_vmem [thread:$0]  %s3260_s3, 2560, %s55_s8, [#allocation9], %s2887_s23, %s2887_s23, %s2888_s24  }
  0x2c   :  { %2877 = dma.done.wait [#allocation3], 256  }
  0x2d   :  { %2878 = vsyncadd [#allocation3], 4294967040 }
  0x2e   :  { %2879 = dma.done.wait [#allocation6], 384  }
  0x2f   :  { %2880 = vsyncadd [#allocation6], 4294966912 }
  0x30   :  { %2881 = dma.done.wait [#allocation9], 2560  }
  0x31   :  { %2882 = vsyncadd [#allocation9], 4294964736  ;;  %vm96_vm0 = vcmask 261120   ;;  %v2959_v0 = vld [vmem:[#allocation2] sm:$0xff]  ;;  %v2961_v1 = vld [vmem:[#allocation2 + $0x8] sm:$0xff]  ;;  %v124_v23 = vlaneseq  ;;  %v2891_v39 = vmov 0.0  }
  0x32   :  { %v97_v2 = vsel %vm96_vm0, %v2959_v0, 0.0  ;;  %v100_v3 = vsel %vm96_vm0, %v2961_v1, 0.0  ;;  %v79_v14 = vld [vmem:[#allocation8 + $0x18] sm:$0xff]  ;;  %v78_v15 = vld [vmem:[#allocation8 + $0x10] sm:$0xff]  ;;  %v77_v16 = vld [vmem:[#allocation8 + $0x8] sm:$0xff]  ;;  %2569 = vmatprep.subr.mxu1 %v2891_v39  ;;  %vm2892_vm1 = vmmov 0  }
  0x33   :  { %98 = vadd.xlane.f32.xlu0 %v97_v2  ;;  %2553 = vmatprep.subr.mxu0 %v79_v14  ;;  %v76_v17 = vld [vmem:[#allocation8] sm:$0xff]  ;;  %v2971_v25 = vshrl.u32 %v124_v23, 7  ;;  %v2974_v27 = vld [vmem:[#allocation7] sm:$0xff]  ;;  %s2893_s2 = smov 96   ;;  %s2894_s3 = smov 88   ;;  %vm229_vm2 = vcmask 64512  }
  0x34   :  { %2554 = vmatpush3.msra.mxu0 %v79_v14  ;;  %2571 = vmatprep.mubr.msk.f32.mxu1 %vm2892_vm1, %v2891_v39  ;;  %s2895_s13 = smov 120   ;;  %v3016_v50 = vld [vmem:[#allocation5] sm:$0xff]  ;;  %v3019_v51 = vld [vmem:[#allocation5 + $0x8] sm:$0xff]  ;;  %s2896_s14 = smov 64   ;;  %vm2187_vm5 = vcmask 130048   ;;  %vm2189_vm6 = vcmask 195584  }
  0x35   :  { %2555 = vmatprep.subr.mxu0 %v78_v15  ;;  %v126_v26 = vsub.s32 0, %v2971_v25  ;;  %v132_v28 = vsub.s32 1, %v2971_v25  ;;  %v138_v40 = vsub.s32 6, %v2971_v25  ;;  %vm222_vm3 = vcmp.gt.s32.totalorder %v3016_v50, 0  ;;  %s2897_s15 = smov 56   ;;  %s2898_s16 = smov 80  }
  0x36   :  { %2556 = vmatpush3.msra.mxu0 %v78_v15  ;;  %vm225_vm4 = vcmp.gt.s32.totalorder %v3019_v51, 0  ;;  %s2899_s17 = smov 112   ;;  %s2900_s18 = smov 48   ;;  %vm2192_vm7 = vcmask 326656   ;;  %vm2194_vm8 = vcmask 392192   ;;  %vm2196_vm9 = vcmask 457728  }
  0x37   :  { %101 = vadd.xlane.f32.xlu0 %v100_v3  ;;  %2557 = vmatprep.subr.mxu0 %v77_v16  ;;  %v127_v29 = vrot.slane %v2974_v27, %v126_v26  ;;  %v133_v32 = vrot.slane %v2974_v27, %v132_v28  ;;  %v139_v41 = vrot.slane %v2974_v27, %v138_v40  ;;  %s2901_s19 = smov 72   ;;  %s2902_s20 = smov 104   ;;  %vm2198_vm10 = vcmask 523264  }
  0x38   :  { %2558 = vmatpush3.msra.mxu0 %v77_v16  ;;  %s2903_s21 = smov 40   ;;  %s2904_s22 = smov 16  }
  0x39   :  { %2559 = vmatprep.subr.mxu0 %v76_v17  ;;  %s2905_s25 = smov 24   ;;  %s2906_s26 = smov 32  }
  0x3a   :  { %2560 = vmatpush3.msra.mxu0 %v76_v17 }
  0x3b   :  { %2564 = vmatprep.subr.mxu0 %v2891_v39 }
  0xbc   :  { %v99_v4 = vpop.xlane.xlu0 %98 }
  0xbd   :  { %v104_v5 = vmul.f32 0.03125, %v99_v4 }
  0xbf   :  { %v106_v6 = vsub.f32 %v2959_v0, %v104_v5 }
  0xc0   :  { %v102_v7 = vpop.xlane.xlu0 %101 }
  0xc1   :  { %v105_v8 = vmul.f32 0.03125, %v102_v7  ;;  %v108_v9 = vmul.f32 %v106_v6, %v106_v6 }
  0xc3   :  { %v107_v10 = vsub.f32 %v2961_v1, %v105_v8  ;;  %v110_v11 = vsel %vm96_vm0, %v108_v9, 0.0 }
  0xc4   :  { %111 = vadd.xlane.f32.xlu1 %v110_v11 }
  0xc5   :  { %v109_v12 = vmul.f32 %v107_v10, %v107_v10 }
  0xc7   :  { %v113_v13 = vsel %vm96_vm0, %v109_v12, 0.0 }
  0xc8   :  { %114 = vadd.xlane.f32.xlu1 %v113_v13 }
 0x14d   :  { %v112_v18 = vpop.xlane.xlu1 %111 }
 0x14e   :  { %v116_v19 = vmul.f32 0.03125, %v112_v18 }
 0x150   :  { %v118_v20 = vadd.f32 1e-05, %v116_v19 }
 0x151   :  { %v115_v21 = vpop.xlane.xlu1 %114 }
 0x152   :  { %2737 = vrsqrt.f32 %v118_v20  ;;  %v117_v22 = vmul.f32 0.03125, %v115_v21 }
 0x154   :  { %v119_v24 = vadd.f32 1e-05, %v117_v22 }
 0x156   :  { %2739 = vrsqrt.f32 %v119_v24 }
 0x15f   :  { %v2738_v30 = vpop.eup %2737 }
 0x160   :  { %v122_v31 = vmul.f32 %v2738_v30, %v106_v6 }
 0x162   :  { %v128_v33 = vmul.f32 %v127_v29, %v122_v31 }
 0x163   :  { %v2740_v34 = vpop.eup %2739 }
 0x164   :  { %v123_v35 = vmul.f32 %v2740_v34, %v107_v10  ;;  %v134_v36 = vadd.f32 %v133_v32, %v128_v33 }
 0x166   :  { %v129_v37 = vmul.f32 %v127_v29, %v123_v35  ;;  %2561 = vmatprep.mubr.msk.f32.mxu0 %vm96_vm0, %v134_v36 }
 0x168   :  { %v135_v38 = vadd.f32 %v133_v32, %v129_v37 }
 0x16a   :  { %2562 = vmatmul.mubr.msk.f32.vlgmr.msra.gmra.mxu0 %vm96_vm0, %v135_v38 }
 0x16b   :  { %2566 = vmatprep.mubr.msk.f32.mxu0 %vm2892_vm1, %v2891_v39 }
 0x22a   :  { %v2563_v42 = vpop.f32.mrf.mxu0 }
 0x22b   :  { %v2989_v43 = vadd.f32 %v2563_v42, %v139_v41  ;;  %v81_v42 = vld [vmem:[#allocation8 + $0x28] sm:$0xff] }
 0x22c   :  { %v212_v44 = vpop.f32.mrf.mxu0 }
 0x22d   :  { %v2991_v45 = vadd.f32 %v212_v44, %v139_v41  ;;  %396 = vrot.lane.b32.xlu1 %v2989_v43, %s2893_s2  ;;  %v80_v41 = vld [vmem:[#allocation8 + $0x20] sm:$0xff] }
 0x22f   :  { %227 = vrot.lane.b32.xlu0 %v2991_v45, %s2893_s2 }
 0x231   :  { %565 = vrot.lane.b32.xlu1 %v2991_v45, %s2894_s3 }
 0x235   :  { %563 = vrot.lane.b32.xlu1 %v2991_v45, %s2895_s13 }
 0x29f   :  { %v397_v46 = vpop.permute.xlu1 %396 }
 0x2a1   :  { %v228_v47 = vpop.permute.xlu0 %227 }
 0x2a2   :  { %2565 = vmatpush3.xpose.msk.msra.mxu0 %vm229_vm2, %v228_v47 }
 0x2a3   :  { %2574 = vmatprep.subr.mxu0 %v2891_v39  ;;  %v566_v48 = vpop.permute.xlu1 %565 }
 0x2a5   :  { %2567 = vmatmul.mubr.msk.f32.vlgmr.msra.gmra.mxu0 %vm229_vm2, %v2991_v45 }
 0x2a6   :  { %2575 = vmatpush3.xpose.msk.msra.mxu0 %vm229_vm2, %v397_v46  ;;  %2576 = vmatprep.mubr.msk.f32.mxu0 %vm2892_vm1, %v2891_v39 }
 0x2a7   :  { %2584 = vmatprep.subr.mxu0 %v2891_v39  ;;  %v564_v49 = vpop.permute.xlu1 %563 }
 0x2a9   :  { %2577 = vmatmul.mubr.msk.f32.vlgmr.msra.gmra.mxu0 %vm229_vm2, %v2989_v43 }
 0x2aa   :  { %2585 = vmatpush3.xpose.msk.msra.mxu0 %vm229_vm2, %v566_v48  ;;  %2586 = vmatprep.mubr.msk.f32.mxu0 %vm2892_vm1, %v2891_v39 }
 0x2ab   :  { %2594 = vmatprep.subr.mxu0 %v2891_v39 }
 0x2ad   :  { %2587 = vmatmul.mubr.msk.f32.vlgmr.msra.gmra.mxu0 %vm229_vm2, %v564_v49 }
 0x2ae   :  { %2596 = vmatprep.mubr.msk.f32.mxu0 %vm2892_vm1, %v2891_v39  ;;  %2595 = vmatpush3.msra.mxu0 %v81_v42 }
 0x2af   :  { %2604 = vmatprep.subr.mxu0 %v2891_v39 }
 0x365   :  { %v300_v52 = vpop.f32.mrf.mxu0 }
 0x366   :  { %v304_v53 = vsel %vm222_vm3, -1e+09, %v300_v52 }
 0x367   :  { %v2568_v54 = vpop.f32.mrf.mxu0  ;;  %v305_v55 = vsel %vm229_vm2, %v304_v53, -inf }
 0x368   :  { %306 = vmax.xlane.f32.xlu0 %v305_v55 }
 0x369   :  { %v468_v56 = vpop.f32.mrf.mxu0 }
 0x36a   :  { %v472_v57 = vsel %vm225_vm4, -1e+09, %v468_v56 }
 0x36b   :  { %v2578_v58 = vpop.f32.mrf.mxu0  ;;  %v473_v59 = vsel %vm229_vm2, %v472_v57, -inf }
 0x36c   :  { %474 = vmax.xlane.f32.xlu1 %v473_v59 }
 0x36d   :  { %v637_v60 = vpop.f32.mrf.mxu0 }
 0x36e   :  { %v641_v61 = vsel %vm222_vm3, -1e+09, %v637_v60 }
 0x36f   :  { %v2588_v62 = vpop.f32.mrf.mxu0  ;;  %v642_v63 = vsel %vm229_vm2, %v641_v61, -inf }
 0x370   :  { %643 = vmax.xlane.f32.xlu0 %v642_v63 }
 0x37d   :  { %487 = vrot.lane.b32.xlu1 %v2989_v43, %s2896_s14 }
 0x3f1   :  { %v307_v2 = vpop.xlane.xlu0 %306 }
 0x3f2   :  { %v308_v3 = vsub.f32 %v304_v53, %v307_v2 }
 0x3f4   :  { %v309_v4 = vmul.f32 1.442695, %v308_v3 }
 0x3f5   :  { %v475_v5 = vpop.xlane.xlu1 %474 }
 0x3f6   :  { %2741 = vpow2.f32 %v309_v4  ;;  %v476_v6 = vsub.f32 %v472_v57, %v475_v5 }
 0x3f8   :  { %v477_v7 = vmul.f32 1.442695, %v476_v6 }
 0x3f9   :  { %v644_v8 = vpop.xlane.xlu0 %643  ;;  %v488_v18 = vpop.permute.xlu1 %487 }
 0x3fa   :  { %2743 = vpow2.f32 %v477_v7  ;;  %v645_v9 = vsub.f32 %v641_v61, %v644_v8 }
 0x3fc   :  { %v646_v10 = vmul.f32 1.442695, %v645_v9 }
 0x3fe   :  { %2745 = vpow2.f32 %v646_v10 }
 0x403   :  { %v2742_v11 = vpop.eup %2741 }
 0x404   :  { %v311_v12 = vsel %vm229_vm2, %v2742_v11, 0.0 }
 0x405   :  { %312 = vadd.xlane.f32.xlu0 %v311_v12 }
 0x407   :  { %v2744_v13 = vpop.eup %2743 }
 0x408   :  { %v479_v14 = vsel %vm229_vm2, %v2744_v13, 0.0 }
 0x409   :  { %480 = vadd.xlane.f32.xlu0 %v479_v14 }
 0x40b   :  { %v2746_v15 = vpop.eup %2745 }
 0x40c   :  { %v648_v16 = vsel %vm229_vm2, %v2746_v15, 0.0 }
 0x40d   :  { %649 = vadd.xlane.f32.xlu1 %v648_v16 }
 0x41e   :  { %656 = vrot.lane.b32.xlu1 %v2991_v45, %s2897_s15 }
 0x41f   :  { %319 = vrot.lane.b32.xlu0 %v2991_v45, %s2896_s14 }
 0x422   :  { %880 = vrot.lane.b32.xlu1 %v2989_v43, %s2894_s3 }
 0x423   :  { %878 = vrot.lane.b32.xlu0 %v2989_v43, %s2895_s13 }
 0x48e   :  { %v313_v17 = vpop.xlane.xlu0 %312 }
 0x48f   :  { %2747 = vrcp.f32 %v313_v17 }
 0x492   :  { %v481_v19 = vpop.xlane.xlu0 %480 }
 0x493   :  { %2749 = vrcp.f32 %v481_v19 }
 0x496   :  { %v650_v20 = vpop.xlane.xlu1 %649  ;;  %v320_v21 = vpop.permute.xlu0 %319 }
 0x497   :  { %2751 = vrcp.f32 %v650_v20  ;;  %2570 = vmatpush3.msra.mxu1 %v320_v21 }
 0x498   :  { %2579 = vmatprep.subr.mxu1 %v2891_v39 }
 0x49a   :  { %v657_v38 = vpop.permute.xlu1 %656  ;;  %v879_v54 = vpop.permute.xlu0 %878 }
 0x49c   :  { %v2748_v22 = vpop.eup %2747 }
 0x49d   :  { %v315_v23 = vmul.f32 %v2748_v22, %v313_v17 }
 0x49e   :  { %v881_v52 = vpop.permute.xlu1 %880 }
 0x49f   :  { %v316_v24 = vsub.f32 2.0, %v315_v23 }
 0x4a0   :  { %v2750_v26 = vpop.eup %2749 }
 0x4a1   :  { %v317_v28 = vmul.f32 %v2748_v22, %v316_v24  ;;  %v483_v29 = vmul.f32 %v2750_v26, %v481_v19 }
 0x4a3   :  { %v3043_v30 = vmul.f32 %v2742_v11, %v317_v28  ;;  %v484_v31 = vsub.f32 2.0, %v483_v29 }
 0x4a4   :  { %v2752_v32 = vpop.eup %2751 }
 0x4a5   :  { %v485_v33 = vmul.f32 %v2750_v26, %v484_v31  ;;  %v652_v34 = vmul.f32 %v2752_v32, %v650_v20  ;;  %2572 = vmatmul.mubr.msk.f32.vlgmr.msra.gmra.mxu1 %vm229_vm2, %v3043_v30 }
 0x4a6   :  { %2580 = vmatpush3.msra.mxu1 %v488_v18  ;;  %2581 = vmatprep.mubr.msk.f32.mxu1 %vm2892_vm1, %v2891_v39 }
 0x4a7   :  { %v3049_v35 = vmul.f32 %v2744_v13, %v485_v33  ;;  %v653_v36 = vsub.f32 2.0, %v652_v34  ;;  %2589 = vmatprep.subr.mxu1 %v2891_v39 }
 0x4a9   :  { %v654_v37 = vmul.f32 %v2752_v32, %v653_v36  ;;  %2582 = vmatmul.mubr.msk.f32.vlgmr.msra.gmra.mxu1 %vm229_vm2, %v3049_v35 }
 0x4aa   :  { %2590 = vmatpush3.msra.mxu1 %v657_v38  ;;  %2591 = vmatprep.mubr.msk.f32.mxu1 %vm2892_vm1, %v2891_v39 }
 0x4ab   :  { %v3056_v40 = vmul.f32 %v2746_v15, %v654_v37  ;;  %2599 = vmatprep.subr.mxu1 %v2891_v39 }
 0x4ad   :  { %2592 = vmatmul.mubr.msk.f32.vlgmr.msra.gmra.mxu1 %vm229_vm2, %v3056_v40 }
 0x4ae   :  { %2601 = vmatprep.mubr.msk.f32.mxu1 %vm2892_vm1, %v2891_v39  ;;  %2600 = vmatpush3.msra.mxu1 %v80_v41 }
 0x4af   :  { %2609 = vmatprep.subr.mxu1 %v2891_v39 }
 0x565   :  { %v391_v44 = vpop.f32.mrf.mxu1 }
 0x566   :  { %2602 = vmatmul.mubr.msk.f32.vlgmr.msra.gmra.mxu1 %vm229_vm2, %v391_v44 }
 0x567   :  { %v2573_v46 = vpop.f32.mrf.mxu1  ;;  %2611 = vmatprep.mubr.msk.f32.mxu1 %vm2892_vm1, %v2891_v39 }
 0x569   :  { %v559_v47 = vpop.f32.mrf.mxu1 }
 0x56b   :  { %v2583_v48 = vpop.f32.mrf.mxu1 }
 0x56c   :  { %v82_v48 = vld [vmem:[#allocation8 + $0x30] sm:$0xff] }
 0x56d   :  { %v728_v49 = vpop.f32.mrf.mxu1 }
 0x56e   :  { %2597 = vmatmul.mubr.msk.f32.vlgmr.msra.gmra.mxu0 %vm229_vm2, %v728_v49 }
 0x56f   :  { %2605 = vmatpush3.xpose.msk.msra.mxu0 %vm229_vm2, %v881_v52  ;;  %v2593_v53 = vpop.f32.mrf.mxu1  ;;  %2606 = vmatprep.mubr.msk.f32.mxu0 %vm2892_vm1, %v2891_v39 }
 0x570   :  { %2614 = vmatprep.subr.mxu0 %v2891_v39 }
 0x572   :  { %2607 = vmatmul.mubr.msk.f32.vlgmr.msra.gmra.mxu0 %vm229_vm2, %v879_v54 }
 0x573   :  { %2615 = vmatpush3.msra.mxu0 %v81_v42  ;;  %2616 = vmatprep.mubr.msk.f32.mxu0 %vm2892_vm1, %v2891_v39 }
 0x574   :  { %2624 = vmatprep.subr.mxu0 %v2891_v39 }
 0x626   :  { %v874_v55 = vpop.f32.mrf.mxu1 }
 0x628   :  { %v2603_v56 = vpop.f32.mrf.mxu1 }
 0x62e   :  { %v801_v57 = vpop.f32.mrf.mxu0 }
 0x62f   :  { %v3077_v58 = vadd.f32 %v874_v55, %v801_v57 }
 0x630   :  { %v2598_v59 = vpop.f32.mrf.mxu0 }
 0x632   :  { %v952_v60 = vpop.f32.mrf.mxu0 }
 0x633   :  { %v956_v61 = vsel %vm225_vm4, -1e+09, %v952_v60 }
 0x634   :  { %v2608_v62 = vpop.f32.mrf.mxu0  ;;  %v957_v63 = vsel %vm229_vm2, %v956_v61, -inf }
 0x635   :  { %958 = vmax.xlane.f32.xlu1 %v957_v63 }
 0x646   :  { %1195 = vrot.lane.b32.xlu1 %v2991_v45, %s2898_s16 }
 0x64a   :  { %1193 = vrot.lane.b32.xlu1 %v2991_v45, %s2899_s17 }
 0x6be   :  { %v959_v2 = vpop.xlane.xlu1 %958 }
 0x6bf   :  { %v960_v3 = vsub.f32 %v956_v61, %v959_v2 }
 0x6c1   :  { %v961_v4 = vmul.f32 1.442695, %v960_v3 }
 0x6c2   :  { %v1196_v14 = vpop.permute.xlu1 %1195 }
 0x6c3   :  { %2753 = vpow2.f32 %v961_v4 }
 0x6c6   :  { %v1194_v17 = vpop.permute.xlu1 %1193 }
 0x6d0   :  { %v2754_v5 = vpop.eup %2753 }
 0x6d1   :  { %v963_v6 = vsel %vm229_vm2, %v2754_v5, 0.0 }
 0x6d2   :  { %964 = vadd.xlane.f32.xlu0 %v963_v6 }
 0x6e8   :  { %971 = vrot.lane.b32.xlu0 %v2989_v43, %s2897_s15 }
 0x75b   :  { %v965_v7 = vpop.xlane.xlu0 %964 }
 0x75c   :  { %2755 = vrcp.f32 %v965_v7 }
 0x75f   :  { %v972_v8 = vpop.permute.xlu0 %971 }
 0x760   :  { %2610 = vmatpush3.msra.mxu1 %v972_v8 }
 0x761   :  { %2619 = vmatprep.subr.mxu1 %v2891_v39 }
 0x769   :  { %v2756_v9 = vpop.eup %2755 }
 0x76a   :  { %v967_v10 = vmul.f32 %v2756_v9, %v965_v7 }
 0x76c   :  { %v968_v11 = vsub.f32 2.0, %v967_v10 }
 0x76e   :  { %v969_v12 = vmul.f32 %v2756_v9, %v968_v11 }
 0x770   :  { %v3090_v13 = vmul.f32 %v2754_v5, %v969_v12 }
 0x772   :  { %2612 = vmatmul.mubr.msk.f32.vlgmr.msra.gmra.mxu1 %vm229_vm2, %v3090_v13 }
 0x773   :  { %2620 = vmatpush3.msra.mxu1 %v80_v41  ;;  %2621 = vmatprep.mubr.msk.f32.mxu1 %vm2892_vm1, %v2891_v39 }
 0x774   :  { %2629 = vmatprep.subr.mxu1 %v2891_v39 }
 0x776   :  { %2622 = vmatmul.mubr.msk.f32.vlgmr.msra.gmra.mxu1 %vm229_vm2, %v559_v47 }
 0x777   :  { %2631 = vmatprep.mubr.msk.f32.mxu1 %vm2892_vm1, %v2891_v39 }
 0x832   :  { %v1043_v15 = vpop.f32.mrf.mxu1 }
 0x833   :  { %2617 = vmatmul.mubr.msk.f32.vlgmr.msra.gmra.mxu0 %vm229_vm2, %v1043_v15 }
 0x834   :  { %2625 = vmatpush3.xpose.msk.msra.mxu0 %vm229_vm2, %v1196_v14  ;;  %v2613_v16 = vpop.f32.mrf.mxu1  ;;  %2626 = vmatprep.mubr.msk.f32.mxu0 %vm2892_vm1, %v2891_v39 }
 0x835   :  { %2634 = vmatprep.subr.mxu0 %v2891_v39 }
 0x836   :  { %v3105_v18 = vpop.f32.mrf.mxu1 }
 0x837   :  { %2627 = vmatmul.mubr.msk.f32.vlgmr.msra.gmra.mxu0 %vm229_vm2, %v1194_v17 }
 0x838   :  { %v2623_v19 = vpop.f32.mrf.mxu1  ;;  %2636 = vmatprep.mubr.msk.f32.mxu0 %vm2892_vm1, %v2891_v39  ;;  %2635 = vmatpush3.msra.mxu0 %v82_v48 }
 0x839   :  { %2644 = vmatprep.subr.mxu0 %v2891_v39 }
 0x8f3   :  { %v3110_v20 = vpop.f32.mrf.mxu0 }
 0x8f5   :  { %v2618_v21 = vpop.f32.mrf.mxu0 }
 0x8f7   :  { %v1267_v22 = vpop.f32.mrf.mxu0 }
 0x8f8   :  { %v1271_v23 = vsel %vm222_vm3, -1e+09, %v1267_v22 }
 0x8f9   :  { %v2628_v24 = vpop.f32.mrf.mxu0  ;;  %v1272_v26 = vsel %vm229_vm2, %v1271_v23, -inf }
 0x8fa   :  { %1273 = vmax.xlane.f32.xlu0 %v1272_v26 }
 0x910   :  { %1286 = vrot.lane.b32.xlu0 %v2991_v45, %s2900_s18 }
 0x914   :  { %1436 = vrot.lane.b32.xlu0 %v2989_v43, %s2899_s17 }
 0x983   :  { %v1274_v28 = vpop.xlane.xlu0 %1273 }
 0x984   :  { %v1275_v29 = vsub.f32 %v1271_v23, %v1274_v28 }
 0x986   :  { %v1276_v31 = vmul.f32 1.442695, %v1275_v29 }
 0x987   :  { %v1287_v32 = vpop.permute.xlu0 %1286 }
 0x988   :  { %2757 = vpow2.f32 %v1276_v31  ;;  %2630 = vmatpush3.msra.mxu1 %v1287_v32 }
 0x989   :  { %2639 = vmatprep.subr.mxu1 %v2891_v39 }
 0x98b   :  { %v1437_v47 = vpop.permute.xlu0 %1436 }
 0x995   :  { %v2758_v33 = vpop.eup %2757 }
 0x996   :  { %v1278_v34 = vsel %vm229_vm2, %v2758_v33, 0.0 }
 0x997   :  { %1279 = vadd.xlane.f32.xlu1 %v1278_v34 }
 0x9a8   :  { %1438 = vrot.lane.b32.xlu1 %v2989_v43, %s2898_s16 }
 0xa20   :  { %v1280_v36 = vpop.xlane.xlu1 %1279 }
 0xa21   :  { %2759 = vrcp.f32 %v1280_v36 }
 0xa24   :  { %v1439_v46 = vpop.permute.xlu1 %1438 }
 0xa2e   :  { %v2760_v37 = vpop.eup %2759 }
 0xa2f   :  { %v1282_v38 = vmul.f32 %v2760_v37, %v1280_v36 }
 0xa31   :  { %v1283_v41 = vsub.f32 2.0, %v1282_v38 }
 0xa33   :  { %v1284_v42 = vmul.f32 %v2760_v37, %v1283_v41 }
 0xa35   :  { %v3123_v44 = vmul.f32 %v2758_v33, %v1284_v42 }
 0xa37   :  { %2632 = vmatmul.mubr.msk.f32.vlgmr.msra.gmra.mxu1 %vm229_vm2, %v3123_v44 }
 0xa38   :  { %2640 = vmatpush3.xpose.msk.msra.mxu1 %vm229_vm2, %v1439_v46  ;;  %2641 = vmatprep.mubr.msk.f32.mxu1 %vm2892_vm1, %v2891_v39 }
 0xa39   :  { %2649 = vmatprep.subr.mxu1 %v2891_v39 }
 0xa3b   :  { %2642 = vmatmul.mubr.msk.f32.vlgmr.msra.gmra.mxu1 %vm229_vm2, %v1437_v47 }
 0xa3c   :  { %2651 = vmatprep.mubr.msk.f32.mxu1 %vm2892_vm1, %v2891_v39  ;;  %2650 = vmatpush3.msra.mxu1 %v82_v48 }
 0xa3d   :  { %2659 = vmatprep.subr.mxu1 %v2891_v39 }
 0xaf7   :  { %v1358_v49 = vpop.f32.mrf.mxu1 }
 0xaf8   :  { %2637 = vmatmul.mubr.msk.f32.vlgmr.msra.gmra.mxu0 %vm229_vm2, %v1358_v49 }
 0xaf9   :  { %v2633_v52 = vpop.f32.mrf.mxu1  ;;  %2646 = vmatprep.mubr.msk.f32.mxu0 %vm2892_vm1, %v2891_v39 }
 0xafb   :  { %v1510_v53 = vpop.f32.mrf.mxu1 }
 0xafc   :  { %v1514_v54 = vsel %vm225_vm4, -1e+09, %v1510_v53 }
 0xafd   :  { %v2643_v55 = vpop.f32.mrf.mxu1  ;;  %v1515_v56 = vsel %vm229_vm2, %v1514_v54, -inf }
 0xafe   :  { %1516 = vmax.xlane.f32.xlu1 %v1515_v56 }
 0xb0f   :  { %1681 = vrot.lane.b32.xlu1 %v2991_v45, %s2901_s19 }
 0xb13   :  { %1679 = vrot.lane.b32.xlu1 %v2991_v45, %s2902_s20 }
 0xb87   :  { %v1517_v57 = vpop.xlane.xlu1 %1516 }
 0xb88   :  { %v1518_v59 = vsub.f32 %v1514_v54, %v1517_v57 }
 0xb8a   :  { %v1519_v60 = vmul.f32 1.442695, %v1518_v59 }
 0xb8b   :  { %v1682_v10 = vpop.permute.xlu1 %1681 }
 0xb8c   :  { %2761 = vpow2.f32 %v1519_v60 }
 0xb99   :  { %v2762_v61 = vpop.eup %2761 }
 0xb9a   :  { %v1521_v62 = vsel %vm229_vm2, %v2762_v61, 0.0 }
 0xb9b   :  { %1522 = vadd.xlane.f32.xlu0 %v1521_v62 }
 0xbb1   :  { %1529 = vrot.lane.b32.xlu0 %v2989_v43, %s2900_s18 }
 0xbb8   :  { %v1431_v63 = vpop.f32.mrf.mxu0 }
 0xbb9   :  { %v3150_v2 = vadd.f32 %v1431_v63, %v3077_v58  ;;  %v1680_v58 = vpop.permute.xlu1 %1679 }
 0xbba   :  { %v2638_v3 = vpop.f32.mrf.mxu0 }
 0xc24   :  { %v1523_v4 = vpop.xlane.xlu0 %1522 }
 0xc25   :  { %2763 = vrcp.f32 %v1523_v4 }
 0xc28   :  { %v1530_v5 = vpop.permute.xlu0 %1529 }
 0xc29   :  { %2645 = vmatpush3.msra.mxu0 %v1530_v5 }
 0xc2a   :  { %2654 = vmatprep.subr.mxu0 %v2891_v39 }
 0xc32   :  { %v2764_v6 = vpop.eup %2763 }
 0xc33   :  { %v1525_v7 = vmul.f32 %v2764_v6, %v1523_v4 }
 0xc35   :  { %v1526_v8 = vsub.f32 2.0, %v1525_v7 }
 0xc37   :  { %v1527_v9 = vmul.f32 %v2764_v6, %v1526_v8 }
 0xc39   :  { %v3153_v11 = vmul.f32 %v2762_v61, %v1527_v9 }
 0xc3b   :  { %2647 = vmatmul.mubr.msk.f32.vlgmr.msra.gmra.mxu0 %vm229_vm2, %v3153_v11 }
 0xc3c   :  { %2655 = vmatpush3.xpose.msk.msra.mxu0 %vm229_vm2, %v1682_v10  ;;  %2656 = vmatprep.mubr.msk.f32.mxu0 %vm2892_vm1, %v2891_v39 }
 0xc3d   :  { %2664 = vmatprep.subr.mxu0 %v2891_v39 }
 0xc3f   :  { %2657 = vmatmul.mubr.msk.f32.vlgmr.msra.gmra.mxu0 %vm229_vm2, %v1680_v58 }
 0xc40   :  { %2666 = vmatprep.mubr.msk.f32.mxu0 %vm2892_vm1, %v2891_v39 }
 0xcfb   :  { %v1601_v12 = vpop.f32.mrf.mxu0 }
 0xcfc   :  { %2652 = vmatmul.mubr.msk.f32.vlgmr.msra.gmra.mxu1 %vm229_vm2, %v1601_v12 }
 0xcfd   :  { %v2648_v14 = vpop.f32.mrf.mxu0  ;;  %2661 = vmatprep.mubr.msk.f32.mxu1 %vm2892_vm1, %v2891_v39 }
 0xcff   :  { %v1753_v15 = vpop.f32.mrf.mxu0 }
 0xd00   :  { %v1757_v16 = vsel %vm222_vm3, -1e+09, %v1753_v15 }
 0xd01   :  { %v2658_v17 = vpop.f32.mrf.mxu0  ;;  %v1758_v19 = vsel %vm229_vm2, %v1757_v16, -inf }
 0xd02   :  { %1759 = vmax.xlane.f32.xlu0 %v1758_v19 }
 0xd18   :  { %1772 = vrot.lane.b32.xlu0 %v2991_v45, %s2903_s21  ;;  %v1190_v45 = vadd.f32 %v3105_v18, %v3110_v20  ;;  %v83_v20 = vld [vmem:[#allocation8 + $0x38] sm:$0xff] }
 0xd19   :  { %2665 = vmatpush3.msra.mxu0 %v83_v20 }
 0xd1a   :  { %2674 = vmatprep.subr.mxu0 %v2891_v39 }
 0xd1c   :  { %1922 = vrot.lane.b32.xlu0 %v2989_v43, %s2902_s20 }
 0xd8b   :  { %v1760_v21 = vpop.xlane.xlu0 %1759 }
 0xd8c   :  { %v1761_v22 = vsub.f32 %v1757_v16, %v1760_v21 }
 0xd8e   :  { %v1762_v23 = vmul.f32 1.442695, %v1761_v22 }
 0xd8f   :  { %v1773_v24 = vpop.permute.xlu0 %1772 }
 0xd90   :  { %2765 = vpow2.f32 %v1762_v23  ;;  %2660 = vmatpush3.msra.mxu1 %v1773_v24 }
 0xd91   :  { %2669 = vmatprep.subr.mxu1 %v2891_v39 }
 0xd93   :  { %v1923_v18 = vpop.permute.xlu0 %1922 }
 0xd9d   :  { %v2766_v50 = vpop.eup %2765 }
 0xd9e   :  { %v1764_v26 = vsel %vm229_vm2, %v2766_v50, 0.0 }
 0xd9f   :  { %1765 = vadd.xlane.f32.xlu1 %v1764_v26 }
 0xdb0   :  { %1924 = vrot.lane.b32.xlu1 %v2989_v43, %s2901_s19 }
 0xdbc   :  { %v1674_v28 = vpop.f32.mrf.mxu1 }
 0xdbd   :  { %v3180_v29 = vadd.f32 %v1674_v28, %v1190_v45 }
 0xdbe   :  { %v2653_v31 = vpop.f32.mrf.mxu1 }
 0xe28   :  { %v1766_v32 = vpop.xlane.xlu1 %1765 }
 0xe29   :  { %2767 = vrcp.f32 %v1766_v32 }
 0xe2c   :  { %v1925_v41 = vpop.permute.xlu1 %1924 }
 0xe36   :  { %v2768_v33 = vpop.eup %2767 }
 0xe37   :  { %v1768_v34 = vmul.f32 %v2768_v33, %v1766_v32 }
 0xe39   :  { %v1769_v36 = vsub.f32 2.0, %v1768_v34 }
 0xe3b   :  { %v1770_v37 = vmul.f32 %v2768_v33, %v1769_v36 }
 0xe3d   :  { %v1771_v38 = vmul.f32 %v2766_v50, %v1770_v37 }
 0xe3f   :  { %2662 = vmatmul.mubr.msk.f32.vlgmr.msra.gmra.mxu1 %vm229_vm2, %v1771_v38 }
 0xe40   :  { %2670 = vmatpush3.xpose.msk.msra.mxu1 %vm229_vm2, %v1925_v41  ;;  %2671 = vmatprep.mubr.msk.f32.mxu1 %vm2892_vm1, %v2891_v39  ;;  %v86_v41 = vld [vmem:[#allocation8 + $0x50] sm:$0xff] }
 0xe41   :  { %2679 = vmatprep.subr.mxu1 %v2891_v39 }
 0xe43   :  { %2672 = vmatmul.mubr.msk.f32.vlgmr.msra.gmra.mxu1 %vm229_vm2, %v1923_v18  ;;  %v85_v18 = vld [vmem:[#allocation8 + $0x48] sm:$0xff] }
 0xe44   :  { %2681 = vmatprep.mubr.msk.f32.mxu1 %vm2892_vm1, %v2891_v39  ;;  %2680 = vmatpush3.msra.mxu1 %v83_v20  ;;  %v84_v20 = vld [vmem:[#allocation8 + $0x40] sm:$0xff] }
 0xeff   :  { %v1844_v42 = vpop.f32.mrf.mxu1 }
 0xf00   :  { %2667 = vmatmul.mubr.msk.f32.vlgmr.msra.gmra.mxu0 %vm229_vm2, %v1844_v42  ;;  %v94_v42 = vld [vmem:[#allocation8 + $0x90] sm:$0xff] }
 0xf01   :  { %v2663_v46 = vpop.f32.mrf.mxu1  ;;  %2676 = vmatprep.mubr.msk.f32.mxu0 %vm2892_vm1, %v2891_v39  ;;  %v2202_v39 = vsub.s32 4, %v2971_v25 }
 0xf02   :  { %v92_v46 = vld [vmem:[#allocation8 + $0x80] sm:$0xff] }
 0xf03   :  { %v1996_v47 = vpop.f32.mrf.mxu1  ;;  %v2203_v51 = vrot.slane %v2974_v27, %v2202_v39 }
 0xf04   :  { %v2000_v48 = vsel %vm225_vm4, -1e+09, %v1996_v47 }
 0xf05   :  { %v2673_v49 = vpop.f32.mrf.mxu1  ;;  %v2001_v52 = vsel %vm229_vm2, %v2000_v48, -inf }
 0xf06   :  { %2002 = vmax.xlane.f32.xlu1 %v2001_v52 }
 0xf8f   :  { %v2003_v53 = vpop.xlane.xlu1 %2002 }
 0xf90   :  { %v2004_v54 = vsub.f32 %v2000_v48, %v2003_v53 }
 0xf92   :  { %v2005_v55 = vmul.f32 1.442695, %v2004_v54 }
 0xf94   :  { %2769 = vpow2.f32 %v2005_v55 }
 0xfa1   :  { %v2770_v56 = vpop.eup %2769 }
 0xfa2   :  { %v2007_v57 = vsel %vm229_vm2, %v2770_v56, 0.0 }
 0xfa3   :  { %2008 = vadd.xlane.f32.xlu0 %v2007_v57 }
 0xfb9   :  { %2015 = vrot.lane.b32.xlu0 %v2989_v43, %s2903_s21 }
 0xfbd   :  { %2168 = vrot.lane.b32.xlu0 %v3123_v44, %s2904_s22 }
 0xfc0   :  { %v1917_v59 = vpop.f32.mrf.mxu0 }
 0xfc1   :  { %v1921_v60 = vadd.f32 %v1917_v59, %v3150_v2  ;;  %2171 = vrot.lane.b32.xlu0 %v1771_v38, %s2905_s25  ;;  %v87_v38 = vld [vmem:[#allocation8 + $0x58] sm:$0xff] }
 0xfc2   :  { %v2668_v61 = vpop.f32.mrf.mxu0 }
 0xfc3   :  { %v2204_v62 = vadd.f32 %v2203_v51, %v1921_v60 }
 0xfc5   :  { %2174 = vrot.lane.b32.xlu0 %v3049_v35, %s2906_s26  ;;  %v2206_v63 = vadd.f32 %v2204_v62, %v2959_v0 }
 0xfc7   :  { %v2208_v43 = vsel %vm96_vm0, %v2206_v63, 0.0 }
 0xfc8   :  { %2209 = vadd.xlane.f32.xlu1 %v2208_v43 }
 0xfc9   :  { %2177 = vrot.lane.b32.xlu0 %v3090_v13, %s2903_s21 }
0x102c   :  { %v2009_v44 = vpop.xlane.xlu0 %2008 }
0x102d   :  { %2771 = vrcp.f32 %v2009_v44 }
0x1030   :  { %v2016_v3 = vpop.permute.xlu0 %2015 }
0x1031   :  { %2675 = vmatpush3.msra.mxu0 %v2016_v3 }
0x1032   :  { %2684 = vmatprep.subr.mxu0 %v87_v38 }
0x1034   :  { %v2169_v47 = vpop.permute.xlu0 %2168 }
0x1038   :  { %v2172_v48 = vpop.permute.xlu0 %2171 }
0x103a   :  { %v2772_v2 = vpop.eup %2771 }
0x103b   :  { %v2011_v4 = vmul.f32 %v2772_v2, %v2009_v44 }
0x103c   :  { %v2175_v49 = vpop.permute.xlu0 %2174 }
0x103d   :  { %v2012_v5 = vsub.f32 2.0, %v2011_v4  ;;  %v91_v4 = vld [vmem:[#allocation8 + $0x78] sm:$0xff] }
0x103f   :  { %v2013_v6 = vmul.f32 %v2772_v2, %v2012_v5  ;;  %v90_v5 = vld [vmem:[#allocation8 + $0x70] sm:$0xff] }
0x1040   :  { %v2178_v57 = vpop.permute.xlu0 %2177 }
0x1041   :  { %v2014_v7 = vmul.f32 %v2770_v56, %v2013_v6  ;;  %v89_v6 = vld [vmem:[#allocation8 + $0x68] sm:$0xff] }
0x1043   :  { %2183 = vrot.lane.b32.xlu0 %v2014_v7, %s2897_s15  ;;  %2677 = vmatmul.mubr.msk.f32.vlgmr.msra.gmra.mxu0 %vm229_vm2, %v2014_v7  ;;  %v88_v7 = vld [vmem:[#allocation8 + $0x60] sm:$0xff] }
0x1044   :  { %2685 = vmatpush3.msra.mxu0 %v87_v38 }
0x1045   :  { %2686 = vmatprep.subr.mxu0 %v86_v41 }
0x1046   :  { %2687 = vmatpush3.msra.mxu0 %v86_v41 }
0x1047   :  { %2688 = vmatprep.subr.mxu0 %v85_v18 }
0x1048   :  { %2689 = vmatpush3.msra.mxu0 %v85_v18 }
0x1049   :  { %2690 = vmatprep.subr.mxu0 %v84_v20 }
0x104a   :  { %2691 = vmatpush3.msra.mxu0 %v84_v20 }
0x1051   :  { %v2210_v8 = vpop.xlane.xlu1 %2209 }
0x1052   :  { %v2214_v9 = vmul.f32 0.03125, %v2210_v8 }
0x1054   :  { %v2216_v12 = vsub.f32 %v2206_v63, %v2214_v9 }
0x1056   :  { %v2218_v17 = vmul.f32 %v2216_v12, %v2216_v12 }
0x1058   :  { %v2220_v19 = vsel %vm96_vm0, %v2218_v17, 0.0 }
0x10b5   :  { %v2184_v62 = vpop.permute.xlu0 %2183 }
0x1103   :  { %v2087_v0 = vpop.f32.mrf.mxu0 }
0x1104   :  { %2682 = vmatmul.mubr.msk.f32.vlgmr.msra.gmra.mxu1 %vm229_vm2, %v2087_v0  ;;  %v2248_v0 = vsub.s32 7, %v2971_v25 }
0x1105   :  { %v2678_v35 = vpop.f32.mrf.mxu0 }
0x1106   :  { %v2249_v35 = vrot.slane %v2974_v27, %v2248_v0 }
0x11c4   :  { %v2160_v13 = vpop.f32.mrf.mxu1 }
0x11c5   :  { %v2164_v10 = vadd.f32 %v2160_v13, %v3180_v29  ;;  %v2242_v29 = vsub.s32 3, %v2971_v25 }
0x11c6   :  { %v2683_v58 = vpop.f32.mrf.mxu1 }
0x11c7   :  { %v2205_v14 = vadd.f32 %v2203_v51, %v2164_v10  ;;  %v2243_v34 = vrot.slane %v2974_v27, %v2242_v29 }
0x11c9   :  { %v2207_v15 = vadd.f32 %v2205_v14, %v2961_v1  ;;  %v2236_v1 = vsub.s32 2, %v2971_v25  ;;  %v2335_v14 = vsub.s32 5, %v2971_v25 }
0x11cb   :  { %v2211_v16 = vsel %vm96_vm0, %v2207_v15, 0.0  ;;  %v2237_v31 = vrot.slane %v2974_v27, %v2236_v1 }
0x11cc   :  { %2212 = vadd.xlane.f32.xlu1 %v2211_v16 }
0x11d0   :  { %2221 = vadd.xlane.f32.xlu1 %v2220_v19 }
0x1255   :  { %v2213_v21 = vpop.xlane.xlu1 %2212 }
0x1256   :  { %v2215_v22 = vmul.f32 0.03125, %v2213_v21 }
0x1258   :  { %v3216_v23 = vsub.f32 %v2207_v15, %v2215_v22  ;;  %v2336_v15 = vrot.slane %v2974_v27, %v2335_v14 }
0x1259   :  { %v2222_v24 = vpop.xlane.xlu1 %2221 }
0x125a   :  { %v2226_v50 = vmul.f32 0.03125, %v2222_v24  ;;  %v2219_v26 = vmul.f32 %v3216_v23, %v3216_v23 }
0x125c   :  { %v2228_v45 = vadd.f32 1e-05, %v2226_v50  ;;  %v2223_v28 = vsel %vm96_vm0, %v2219_v26, 0.0 }
0x125d   :  { %2224 = vadd.xlane.f32.xlu1 %v2223_v28 }
0x125e   :  { %2773 = vrsqrt.f32 %v2228_v45 }
0x126b   :  { %v2774_v32 = vpop.eup %2773 }
0x126c   :  { %v2232_v33 = vmul.f32 %v2774_v32, %v2216_v12 }
0x126e   :  { %2165 = vrot.lane.b32.xlu1 %v3056_v40, %s2888_s24  ;;  %v2238_v36 = vmul.f32 %v2237_v31, %v2232_v33  ;;  %v95_v40 = vld [vmem:[#allocation8 + $0x98] sm:$0xff] }
0x126f   :  { %2695 = vmatprep.subr.mxu1 %v95_v40 }
0x1270   :  { %v3227_v37 = vadd.f32 %v2243_v34, %v2238_v36  ;;  %2696 = vmatpush3.msra.mxu1 %v95_v40 }
0x1271   :  { %2697 = vmatprep.subr.mxu1 %v94_v42 }
0x1272   :  { %2180 = vrot.lane.b32.xlu1 %v3153_v11, %s2900_s18  ;;  %2692 = vmatprep.mubr.msk.f32.mxu0 %vm96_vm0, %v3227_v37  ;;  %v93_v11 = vld [vmem:[#allocation8 + $0x88] sm:$0xff] }
0x1273   :  { %2698 = vmatpush3.msra.mxu1 %v94_v42 }
0x1274   :  { %2699 = vmatprep.subr.mxu1 %v93_v11 }
0x1275   :  { %2700 = vmatpush3.msra.mxu1 %v93_v11 }
0x1276   :  { %2701 = vmatprep.subr.mxu1 %v92_v46 }
0x1277   :  { %2702 = vmatpush3.msra.mxu1 %v92_v46 }
0x1278   :  { %2703 = vmatprep.subr.mxu1 %v91_v4 }
0x1279   :  { %2704 = vmatpush3.msra.mxu1 %v91_v4 }
0x127a   :  { %2705 = vmatprep.subr.mxu1 %v90_v5 }
0x127b   :  { %2706 = vmatpush3.msra.mxu1 %v90_v5 }
0x127c   :  { %2707 = vmatprep.subr.mxu1 %v89_v6 }
0x127d   :  { %2708 = vmatpush3.msra.mxu1 %v89_v6 }
0x127e   :  { %2709 = vmatprep.subr.mxu1 %v88_v7 }
0x127f   :  { %2710 = vmatpush3.msra.mxu1 %v88_v7 }
0x12e6   :  { %v2225_v52 = vpop.xlane.xlu1 %2224 }
0x12e7   :  { %v2227_v53 = vmul.f32 0.03125, %v2225_v52 }
0x12e9   :  { %v2229_v54 = vadd.f32 1e-05, %v2227_v53 }
0x12ea   :  { %v2166_v55 = vpop.permute.xlu1 %2165 }
0x12eb   :  { %2775 = vrsqrt.f32 %v2229_v54  ;;  %v2186_v56 = vsel %vm229_vm2, %v3043_v30, %v2166_v55 }
0x12ec   :  { %v2188_v39 = vsel %vm2187_vm5, %v2186_v56, %v2169_v47 }
0x12ed   :  { %v2190_v51 = vsel %vm2189_vm6, %v2188_v39, %v2172_v48 }
0x12ee   :  { %v2191_v59 = vsel %vm96_vm0, %v2190_v51, %v2175_v49  ;;  %v2181_v60 = vpop.permute.xlu1 %2180 }
0x12ef   :  { %v2193_v61 = vsel %vm2192_vm7, %v2191_v59, %v2178_v57 }
0x12f0   :  { %v2195_v63 = vsel %vm2194_vm8, %v2193_v61, %v2181_v60 }
0x12f1   :  { %v2197_v43 = vsel %vm2196_vm9, %v2195_v63, %v2184_v62 }
0x12f2   :  { %2199 = vst.msk [vmem:[%s3262_s5] sm:$0xff] %vm2198_vm10, %v2197_v43  ;;  %s2907_s5 = smov [#allocation10]  }
0x12f3   :  { %s2427_s29 = sshll.u32 %s2907_s5, 4  ;;  %s2428_s29 = int_to_ptr.vmem [resolvable:$true] %s2427_s29 }
0x12f4   :  { %s2857_s30 = scalar_lea.vmem %s2428_s29, 256  ;;  %p2862_p7 = scmp.lt.s32.totalorder %s2428_s29, %s2428_s29 }
0x12f5   :  { %p2858_p6 = scmp.ne.s32.totalorder %s2428_s29, %s2857_s30  ;;  %p2863_p8 = scmp.lt.s32.totalorder %s2857_s30, %s2857_s30 }
0x12f7   :  { %p2864_p9 = por %p2863_p8, %p2862_p7 }
0x12f8   :  { %v2776_v30 = vpop.eup %2775 }
0x12f9   :  { %v2233_v44 = vmul.f32 %v2776_v30, %v3216_v23  ;;  %p2865_p10 = pnand %p2864_p9, %p2858_p6 }
0x12fb   :  { %v2239_v3 = vmul.f32 %v2237_v31, %v2233_v44 }
0x12fd   :  { %v2245_v2 = vadd.f32 %v2243_v34, %v2239_v3 }
0x12ff   :  { %2693 = vmatmul.mubr.msk.f32.vlgmr.msra.gmra.mxu0 %vm96_vm0, %v2245_v2 }
0x13bf   :  { %v2694_v8 = vpop.f32.mrf.mxu0 }
0x13c0   :  { %v2328_v9 = vadd.f32 %v2694_v8, %v2249_v35 }
0x13c1   :  { %v2322_v13 = vpop.f32.mrf.mxu0 }
0x13c2   :  { %v2323_v10 = vadd.f32 %v2322_v13, %v2249_v35  ;;  %v2332_v12 = vmax.f32 %v2328_v9, 0.0 }
0x13c4   :  { %v2331_v58 = vmax.f32 %v2323_v10, 0.0 }
0x13c6   :  { %2711 = vmatprep.mubr.msk.f32.mxu1 %vm2198_vm10, %v2331_v58 }
0x13c7   :  { %2712 = vmatmul.mubr.msk.f32.vlgmr.msra.gmra.mxu1 %vm2198_vm10, %v2332_v12 }
0x1487   :  { %v2713_v16 = vpop.f32.mrf.mxu1 }
0x1488   :  { %v2415_v17 = vadd.f32 %v2713_v16, %v2336_v15 }
0x1489   :  { %v2409_v19 = vpop.f32.mrf.mxu1 }
0x148a   :  { %v2419_v21 = vadd.f32 %v2415_v17, %v2245_v2  ;;  %v2410_v22 = vadd.f32 %v2409_v19, %v2336_v15 }
0x148c   :  { %2421 = vst.msk [vmem:[#allocation10 + $0x8] sm:$0xff] %vm96_vm0, %v2419_v21  ;;  %v2418_v23 = vadd.f32 %v2410_v22, %v3227_v37 }
0x148e   :  { %2420 = vst.msk [vmem:[#allocation10] sm:$0xff] %vm96_vm0, %v2418_v23 }
0x148f   :  { %2868 = shalt.err (!%p2865_p10)
}
0x1490   :  { %2433 = dma.vmem_to_hbm [thread:$0]  %s2428_s29, 256, %s3261_s4, [#allocation4], %s2887_s23, %s2887_s23, %s2888_s24  }
0x1491   :  { %2883 = dma.done.wait [#allocation4], 256  }
0x1492   :  { %2884 = vsyncadd [#allocation4], 4294967040 }
0x1493   :  { %2441 = vsyncpa [#allocation3], 1 }
0x1494   :  { %2442 = vsyncpa [#allocation6], 1 }
0x1495   :  { %2443 = vsyncpa [#allocation9], 1 }
0x1496   :  { %2444 = vsyncpa [#allocation4], 1 }

</bundles_post_ra>
